<compile_context>
chip_gen: v6e
topology: v6e:2x2x1
jax: 0.10.0
libtpu: 0.0.40
codegen_flags: <defaults>
</compile_context>

<pallas_src>
import math
import numpy as np
import jax
import jax.numpy as jnp
from jax.experimental import pallas as pl
from jax.experimental.pallas import tpu as pltpu

LANE = 128  # lane-dense padding width for the narrow classifier head


def _round_up(x, m):
    return ((x + m - 1) // m) * m


def _pick_tile(n):
    if n >= 2048:
        return 512
    if n >= 512:
        return 256
    return 128


# ----------------------------------------------------------------------------
# Kernel 1: per-patch MLP  (linear1 -> relu, fused gated attention branch,
#           linear3 emitted as a transposed lane-dense (8, tile_n) block).
# ----------------------------------------------------------------------------
def _feature_kernel(x_ref, w1_ref, b1_ref, w2_ref, b2_ref, w3t_ref, b3_ref,
                    h1_ref, params_ref):
    x = x_ref[...]                                             # bf16 [tile_n, D]
    h1 = jnp.dot(x, w1_ref[...], preferred_element_type=jnp.float32) + b1_ref[...]
    h1 = jnp.maximum(h1, 0.0)                                  # ReLU (dp_0 = identity)
    h1_b = h1.astype(jnp.bfloat16)
    h1_ref[...] = h1_b                                         # bf16 [tile_n, 512]

    # fused gated-attention branch: one (512 x 512) MXU pass, slice the halves
    z = jnp.dot(h1_b, w2_ref[...], preferred_element_type=jnp.float32) + b2_ref[...]
    h2 = z.shape[1] // 2
    fa = jax.nn.sigmoid(z[:, :h2])
    fb = jnp.tanh(z[:, h2:])
    feat = (fa * fb).astype(jnp.bfloat16)                      # [tile_n, 256]

    # linear3 head, transposed: (8, 256) x (tile_n, 256)^T -> lane-dense (8, tile_n)
    params_ref[...] = jax.lax.dot_general(
        w3t_ref[...], feat, (((1,), (1,)), ((), ())),
        preferred_element_type=jnp.float32) + b3_ref[...]


def feature_forward(x_pad, params, tile_n):
    N_pad, D = x_pad.shape
    w1, b1 = params["linear1"]
    w2, b2 = params["linear2"]
    w3t, b3 = params["linear3t"]
    H1 = w1.shape[1]
    full = lambda i: (0, 0)

    h1, params_t = pl.pallas_call(
        _feature_kernel,
        out_shape=(jax.ShapeDtypeStruct((N_pad, H1), jnp.bfloat16),
                   jax.ShapeDtypeStruct((8, N_pad), jnp.float32)),
        grid=(N_pad // tile_n,),
        in_specs=[
            pl.BlockSpec((tile_n, D), lambda i: (i, 0)),
            pl.BlockSpec((D, H1), full), pl.BlockSpec((1, H1), full),
            pl.BlockSpec((H1, H1), full), pl.BlockSpec((1, H1), full),
            pl.BlockSpec((8, w3t.shape[1]), full), pl.BlockSpec((8, 1), full),
        ],
        out_specs=(pl.BlockSpec((tile_n, H1), lambda i: (i, 0)),
                   pl.BlockSpec((8, tile_n), lambda i: (0, i))),
        compiler_params=pltpu.CompilerParams(dimension_semantics=("parallel",)),
    )(x_pad, w1, b1, w2, b2, w3t, b3)
    return h1, params_t


# ----------------------------------------------------------------------------
# Kernel 2 (fused tail): scatter -> pad -> separable 3x3 Gaussian -> KL ->
#           reparameterize -> sigmoid attention (all at grid step 0), then
#           per-tile patch_A gather + attention pooling + classifier head.
# ----------------------------------------------------------------------------
def _gauss1d(sigma=0.5, size=3):
    x = np.arange(size, dtype=np.float64)
    mean = (size - 1) / 2.0
    g = (1.0 / (sigma * math.sqrt(2 * math.pi))) * np.exp(-((x - mean) / sigma) ** 2 / 2.0)
    g = g / g.sum()        # normalized 2D kernel == outer(g_norm, g_norm)
    return [float(v) for v in g]


def _tail_kernel_factory(Hb, Wb, g, mu_pr, logvar_pr):
    g0, g1, g2 = (float(v) for v in g)
    mu_pr = float(mu_pr)
    logvar_pr = float(logvar_pr)

    def kernel(row_all_ref, col_all_ref, params_ref, eps_ref, wc_ref, bc_ref,
               row_t_ref, col_t_ref, h_ref,
               kl_ref, pa_ref, logits_ref,
               a2d_sc, acc_sc, ssum_sc):
        t = pl.program_id(0)
        n_tiles = pl.num_programs(0)

        # ------------------ step 0: build the attention map ------------------
        @pl.when(t == 0)
        def _():
            acc_sc[...] = jnp.zeros_like(acc_sc)
            ssum_sc[...] = jnp.zeros_like(ssum_sc)

            row = row_all_ref[...]                     # (1, N_pad) i32 (-2 = pad)
            col = col_all_ref[...]
            n_all = row.shape[1]
            mu_row = params_ref[0:1, :]                # (1, N_pad) f32
            lv_row = params_ref[1:2, :]

            # lane-dense one-hots into the zero-padded (Hb+2, Wb+2) map
            rt_pad = (jax.lax.broadcasted_iota(jnp.int32, (Hb + 2, n_all), 0)
                      == (row + 1)).astype(jnp.float32)            # (Hb+2, N)
            ct_pad = (jax.lax.broadcasted_iota(jnp.int32, (Wb + 2, n_all), 0)
                      == (col + 1)).astype(jnp.float32)            # (Wb+2, N)

            # scatter via one-hot contraction over the lane (N) dim.
            # TODO(synk): duplicate coordinates SUM here; the reference overwrites.
            dn = (((1,), (1,)), ((), ()))
            mu_pad = jax.lax.dot_general(rt_pad, mu_row * ct_pad, dn,
                                         preferred_element_type=jnp.float32)
            lv_pad = jax.lax.dot_general(rt_pad, lv_row * ct_pad, dn,
                                         preferred_element_type=jnp.float32)

            mu2d = mu_pad[1:Hb + 1, 1:Wb + 1]          # raw (un-smoothed) maps
            lv2d = lv_pad[1:Hb + 1, 1:Wb + 1]

            # kl_logistic_normal on the raw mu/logvar (reference formula verbatim)
            kl_ref[...] = ((logvar_pr - lv2d) / 2.0
                           + (lv2d ** 2 + (mu_pr - mu2d) ** 2) / (2.0 * logvar_pr ** 2)
                           - 0.5)

            # separable 3x3 Gaussian ("valid" conv on the zero-padded map)
            cp = (g0 * mu_pad[:, 0:Wb]
                  + g1 * mu_pad[:, 1:Wb + 1]
                  + g2 * mu_pad[:, 2:Wb + 2])          # (Hb+2, Wb)
            sm = (g0 * cp[0:Hb, :]
                  + g1 * cp[1:Hb + 1, :]
                  + g2 * cp[2:Hb + 2, :])              # (Hb, Wb)

            # reparameterize with smoothed mu + raw logvar, sigmoid attention
            std = jnp.exp(0.5 * lv2d)
            a2d_sc[...] = jax.nn.sigmoid(sm + eps_ref[...] * std)

        # ------- every step: gather this tile's patch_A, accumulate pooling -------
        tile = row_t_ref.shape[1]
        row_t = row_t_ref[...]                          # (1, tile) i32
        col_t = col_t_ref[...]
        ct = (jax.lax.broadcasted_iota(jnp.int32, (Wb, tile), 0)
              == col_t).astype(jnp.float32)             # (Wb, tile)
        rt = (jax.lax.broadcasted_iota(jnp.int32, (Hb, tile), 0)
              == row_t).astype(jnp.float32)             # (Hb, tile)
        ga = jnp.dot(a2d_sc[...], ct, preferred_element_type=jnp.float32)   # (Hb, tile)
        pa_t = jnp.sum(rt * ga, axis=0, keepdims=True)  # (1, tile); padded rows -> 0
        pa_ref[...] = pa_t
        ssum_sc[...] += jnp.sum(pa_t, keepdims=True)
        acc_sc[...] += jnp.dot(pa_t.astype(jnp.bfloat16), h_ref[...],
                               preferred_element_type=jnp.float32)          # (1, 512)

        # ------------------ last step: classifier head ------------------
        @pl.when(t == n_tiles - 1)
        def _():
            m = acc_sc[...] / ssum_sc[...]              # exact divide (review request)
            logits_ref[...] = (jnp.dot(m.astype(jnp.bfloat16), wc_ref[...],
                                       preferred_element_type=jnp.float32) + bc_ref[...])

    return kernel


def _tail_vmem_limit(N_pad, tile_n, Hb, Wb, H1, C):
    resident = (8 * N_pad * 4          # params_t
                + 2 * N_pad * 4        # row / col (full)
                + 2 * Hb * Wb * 4      # eps + kl out
                + H1 * C * 2 + 2 * C * 4
                + Hb * Wb * 4          # a2d scratch
                + H1 * 4 + 16)         # acc + ssum scratch
    tiled = 2 * (tile_n * H1 * 2       # h1 tile (bf16), double-buffered
                 + 2 * tile_n * 4      # row/col tiles
                 + tile_n * 4)         # pa out tile
    step0 = (2 * (Hb + 2) + 2 * (Wb + 2)) * N_pad * 4 + 8 * (Hb + 2) * (Wb + 2) * 4
    total = resident + tiled + step0
    return int(min(64 * 2 ** 20, max(32 * 2 ** 20, 2 * total)))


def fused_tail(row_idx, col_idx, params_t, h1, eps, wc, bc,
               *, Hb, Wb, g, mu_pr, logvar_pr, tile_n):
    N_pad, H1 = h1.shape
    C = wc.shape[1]
    n_tiles = N_pad // tile_n
    full = lambda t: (0, 0)
    vmem_limit = _tail_vmem_limit(N_pad, tile_n, Hb, Wb, H1, C)

    kl, pa, logits = pl.pallas_call(
        _tail_kernel_factory(Hb, Wb, g, mu_pr, logvar_pr),
        out_shape=(jax.ShapeDtypeStruct((Hb, Wb), jnp.float32),
                   jax.ShapeDtypeStruct((1, N_pad), jnp.float32),
                   jax.ShapeDtypeStruct((1, C), jnp.float32)),
        grid=(n_tiles,),
        in_specs=[
            pl.BlockSpec((1, N_pad), full),                 # row (resident)
            pl.BlockSpec((1, N_pad), full),                 # col (resident)
            pl.BlockSpec((8, N_pad), full),                 # mu/logvar rows (resident)
            pl.BlockSpec((Hb, Wb), full),                   # eps
            pl.BlockSpec((H1, C), full),                    # classifier weight
            pl.BlockSpec((1, C), full),                     # classifier bias
            pl.BlockSpec((1, tile_n), lambda t: (0, t)),    # row tile
            pl.BlockSpec((1, tile_n), lambda t: (0, t)),    # col tile
            pl.BlockSpec((tile_n, H1), lambda t: (t, 0)),   # h1 streamed / pipelined
        ],
        out_specs=(pl.BlockSpec((Hb, Wb), full),
                   pl.BlockSpec((1, tile_n), lambda t: (0, t)),
                   pl.BlockSpec((1, C), full)),
        scratch_shapes=[pltpu.VMEM((Hb, Wb), jnp.float32),   # attention map
                        pltpu.VMEM((1, H1), jnp.float32),    # pooling accumulator
                        pltpu.VMEM((1, 1), jnp.float32)],    # sum(A) accumulator
        compiler_params=pltpu.CompilerParams(
            dimension_semantics=("arbitrary",),
            vmem_limit_bytes=vmem_limit),
    )(row_idx, col_idx, params_t, eps, wc, bc, row_idx, col_idx, h1)
    return kl, pa, logits


# ----------------------------------------------------------------------------
# Parameter init (deterministic, synthetic) and full forward
# ----------------------------------------------------------------------------
def init_params(key, feat_d, n_class):
    def lin(k, din, dout, scale=0.02):
        kw, kb = jax.random.split(k)
        w = jax.random.normal(kw, (din, dout), jnp.float32) * scale
        b = jax.random.normal(kb, (1, dout), jnp.float32) * 0.01
        return w, b

    ks = jax.random.split(key, 5)
    w1, b1 = lin(ks[0], feat_d, 512)
    w2a, b2a = lin(ks[1], 512, 256)     # LinearVDO -> deterministic linear (eval)
    w2b, b2b = lin(ks[2], 512, 256)
    w3, b3 = lin(ks[3], 256, 2)
    wc, bc = lin(ks[4], 512, n_class)

    # fused gated-attention weight (sigmoid half | tanh half)
    w2 = jnp.concatenate([w2a, w2b], axis=1)            # (512, 512)
    b2 = jnp.concatenate([b2a, b2b], axis=1)            # (1, 512)

    # linear3 head, transposed and padded 2 -> 8 sublanes (lane-dense output)
    w3t = jnp.zeros((8, 256), jnp.float32).at[:2].set(w3.T)
    b3t = jnp.zeros((8, 1), jnp.float32).at[:2, 0].set(b3[0])

    # classifier: columns zero-padded to 128 lanes (sliced off in the wrapper)
    wc_p = jnp.pad(wc, ((0, 0), (0, LANE - n_class)))
    bc_p = jnp.pad(bc, ((0, 0), (0, LANE - n_class)))

    return {
        "linear1":     (w1.astype(jnp.bfloat16), b1),
        "linear2":     (w2.astype(jnp.bfloat16), b2),
        "linear3t":    (w3t.astype(jnp.bfloat16), b3t),
        "classifiers": (wc_p.astype(jnp.bfloat16), bc_p),
        "n_class": n_class,
    }


def bmil_forward(params, h, coords, height, width, patch_size,
                 slide_label, eps_key, validation=False):
    # h: [1, N, feat_d]  (matches PyTorch h[0] indexing)
    x = h[0]
    N = x.shape[0]
    Hb = height // patch_size + 1
    Wb = width // patch_size + 1

    tile_n = _pick_tile(N)
    N_pad = _round_up(N, tile_n)
    x_pad = jnp.pad(x, ((0, N_pad - N), (0, 0))).astype(jnp.bfloat16)

    h1, params_t = feature_forward(x_pad, params, tile_n)   # bf16 [N_pad,512], f32 [8,N_pad]

    # coords -> flat bin index (reference `asign`, incl. the width//patch_size
    # multiplier), decoded to row/col with the Wb divisor (reference reshape).
    # Padded rows get sentinel -2 -> never match any one-hot (free masking).
    c = np.asarray(coords, np.int64) // patch_size
    flat = c[:, 0] + c[:, 1] * (width // patch_size)
    row_np = np.full((1, N_pad), -2, np.int32)
    col_np = np.full((1, N_pad), -2, np.int32)
    row_np[0, :N] = flat // Wb
    col_np[0, :N] = flat % Wb
    row_idx = jnp.asarray(row_np)
    col_idx = jnp.asarray(col_np)

    eps = jax.random.normal(eps_key, (Hb, Wb), jnp.float32)  # torch.randn_like(std)
    g1d = _gauss1d(sigma=0.5, size=3)
    prior_mu = (-5.0, 0.0)
    prior_logvar = (-1.0, 3.0)
    lbl = 0 if slide_label is None else int(slide_label)

    wc, bc = params["classifiers"]
    kl_div, pa_pad, logits_pad = fused_tail(
        row_idx, col_idx, params_t, h1, eps, wc, bc,
        Hb=Hb, Wb=Wb, g=g1d,
        mu_pr=prior_mu[lbl], logvar_pr=prior_logvar[lbl], tile_n=tile_n)

    logits = logits_pad[:, :params["n_class"]]
    patch_A = pa_pad[:, :N]
    y_probs = jax.nn.softmax(logits, axis=1)
    # top_k = 1 over the single bag row
    top_instance_idx = jnp.argsort(-y_probs[:, 1])[:1]
    top_instance = jnp.take(logits, top_instance_idx, axis=0)
    Y_hat = jnp.argmax(top_instance, axis=1, keepdims=True)
    Y_prob = jax.nn.softmax(top_instance, axis=1)

    if not validation:
        return top_instance, Y_prob, Y_hat, kl_div.reshape(1, Hb, Wb), y_probs, patch_A
    return top_instance, Y_prob, Y_hat, y_probs, patch_A


if __name__ == "__main__":
    key = jax.random.PRNGKey(0)
    feat_d, n_class = 32, 2
    patch_size = 16
    height = width = 256          # -> 17x17 spatial bins
    N = 200                       # bag size (padded to 256 -> 2 grid steps, masked)

    kp, kh, ke = jax.random.split(key, 3)
    params = init_params(kp, feat_d, n_class)
    h = jax.random.normal(kh, (1, N, feat_d), jnp.float32)

    # deterministic, unique coordinates on the 16x16 patch grid (numpy, like reference)
    grid_pos = np.stack(
        np.meshgrid(np.arange(16), np.arange(16), indexing="ij"), -1).reshape(-1, 2)[:N]
    coords = (grid_pos * patch_size + 3).astype(np.int32)    # [N, 2]

    out = bmil_forward(params, h, coords, height, width, patch_size,
                       slide_label=1, eps_key=ke, validation=False)
    for leaf in jax.tree_util.tree_leaves(out):
        jax.block_until_ready(leaf)

    top_instance, Y_prob, Y_hat, kl_div, y_probs, patch_A = out
    Hb = height // patch_size + 1
    Wb = width // patch_size + 1
    assert top_instance.shape == (1, n_class)
    assert Y_prob.shape == (1, n_class)
    assert Y_hat.shape == (1, 1)
    assert kl_div.shape == (1, Hb, Wb)
    assert y_probs.shape == (1, n_class)
    assert patch_A.shape == (1, N)
    assert bool(jnp.all(jnp.isfinite(top_instance)))
    assert bool(jnp.all(jnp.isfinite(patch_A)))
    print("KERNEL_OK")
</pallas_src>

<mosaic_0001>
module attributes {stable_mosaic.version = 11 : i64} {
  func.func @_feature_kernel(%arg0: i32, %arg1: memref<128x32xbf16, #tpu.memory_space<vmem>>, %arg2: memref<32x512xbf16, #tpu.memory_space<vmem>>, %arg3: memref<1x512xf32, #tpu.memory_space<vmem>>, %arg4: memref<512x512xbf16, #tpu.memory_space<vmem>>, %arg5: memref<1x512xf32, #tpu.memory_space<vmem>>, %arg6: memref<8x256xbf16, #tpu.memory_space<vmem>>, %arg7: memref<8x1xf32, #tpu.memory_space<vmem>>, %arg8: memref<128x512xbf16, #tpu.memory_space<vmem>>, %arg9: memref<8x128xf32, #tpu.memory_space<vmem>>) attributes {dimension_semantics = [#tpu.dimension_semantics<parallel>], iteration_bounds = array<i64: 2>, scalar_prefetch = 0 : i64, scratch_operands = 0 : i64, tpu.core_type = #tpu.core_type<tc>, window_params = [{transform_indices = @transform_0, window_bounds = array<i64: 128, 32>}, {pipeline_mode = #tpu.pipeline_mode<synchronous>, transform_indices = @transform_1, window_bounds = array<i64: 32, 512>}, {pipeline_mode = #tpu.pipeline_mode<synchronous>, transform_indices = @transform_2, window_bounds = array<i64: 1, 512>}, {pipeline_mode = #tpu.pipeline_mode<synchronous>, transform_indices = @transform_3, window_bounds = array<i64: 512, 512>}, {pipeline_mode = #tpu.pipeline_mode<synchronous>, transform_indices = @transform_4, window_bounds = array<i64: 1, 512>}, {pipeline_mode = #tpu.pipeline_mode<synchronous>, transform_indices = @transform_5, window_bounds = array<i64: 8, 256>}, {pipeline_mode = #tpu.pipeline_mode<synchronous>, transform_indices = @transform_6, window_bounds = array<i64: 8, 1>}, {transform_indices = @transform_7, window_bounds = array<i64: 128, 512>}, {transform_indices = @transform_8, window_bounds = array<i64: 8, 128>}]} {
    %c0 = arith.constant 0 : index
    %c0_0 = arith.constant 0 : index
    %0 = vector.load %arg1[%c0, %c0_0] : memref<128x32xbf16, #tpu.memory_space<vmem>>, vector<128x32xbf16>
    %c0_1 = arith.constant 0 : index
    %c0_2 = arith.constant 0 : index
    %1 = vector.load %arg2[%c0_1, %c0_2] : memref<32x512xbf16, #tpu.memory_space<vmem>>, vector<32x512xbf16>
    %cst = arith.constant dense<0.000000e+00> : vector<128x512xf32>
    %2 = tpu.matmul %0, %1, %cst {dimension_numbers = #tpu.dot_dimension_numbers<[1], [0], [0], [1], [0, 0, 1, 1], [], []>} : vector<128x32xbf16>, vector<32x512xbf16>, vector<128x512xf32> -> vector<128x512xf32>
    %c0_3 = arith.constant 0 : index
    %c0_4 = arith.constant 0 : index
    %3 = vector.load %arg3[%c0_3, %c0_4] : memref<1x512xf32, #tpu.memory_space<vmem>>, vector<1x512xf32>
    %4 = vector.broadcast %3 : vector<1x512xf32> to vector<128x512xf32>
    %5 = arith.addf %2, %4 : vector<128x512xf32>
    %cst_5 = arith.constant 0.000000e+00 : f32
    %6 = vector.broadcast %cst_5 : f32 to vector<128x512xf32>
    %7 = arith.maximumf %5, %6 : vector<128x512xf32>
    %8 = arith.truncf %7 : vector<128x512xf32> to vector<128x512xbf16>
    %c0_6 = arith.constant 0 : index
    %c0_7 = arith.constant 0 : index
    %9 = vector.load %arg8[%c0_6, %c0_7] : memref<128x512xbf16, #tpu.memory_space<vmem>>, vector<128x512xbf16>
    tpu.vector_store %arg8[%c0_6, %c0_7], %8 {strides = array<i32>} : memref<128x512xbf16, #tpu.memory_space<vmem>>, vector<128x512xbf16>,
    %c0_8 = arith.constant 0 : index
    %c0_9 = arith.constant 0 : index
    %10 = vector.load %arg4[%c0_8, %c0_9] : memref<512x512xbf16, #tpu.memory_space<vmem>>, vector<512x512xbf16>
    %cst_10 = arith.constant dense<0.000000e+00> : vector<128x512xf32>
    %11 = tpu.matmul %8, %10, %cst_10 {dimension_numbers = #tpu.dot_dimension_numbers<[1], [0], [0], [1], [0, 0, 1, 1], [], []>} : vector<128x512xbf16>, vector<512x512xbf16>, vector<128x512xf32> -> vector<128x512xf32>
    %c0_11 = arith.constant 0 : index
    %c0_12 = arith.constant 0 : index
    %12 = vector.load %arg5[%c0_11, %c0_12] : memref<1x512xf32, #tpu.memory_space<vmem>>, vector<1x512xf32>
    %13 = vector.broadcast %12 : vector<1x512xf32> to vector<128x512xf32>
    %14 = arith.addf %11, %13 : vector<128x512xf32>
    %15 = vector.extract_strided_slice %14 {offsets = [0, 0], sizes = [128, 256], strides = [1, 1]} : vector<128x512xf32> to vector<128x256xf32>
    %16 = arith.negf %15 : vector<128x256xf32>
    %17 = math.exp %16 : vector<128x256xf32>
    %cst_13 = arith.constant 1.000000e+00 : f32
    %18 = vector.broadcast %cst_13 : f32 to vector<128x256xf32>
    %19 = arith.addf %18, %17 : vector<128x256xf32>
    %20 = arith.divf %18, %19 : vector<128x256xf32>
    %21 = vector.extract_strided_slice %14 {offsets = [0, 256], sizes = [128, 256], strides = [1, 1]} : vector<128x512xf32> to vector<128x256xf32>
    %22 = math.tanh %21 : vector<128x256xf32>
    %23 = arith.mulf %20, %22 : vector<128x256xf32>
    %24 = arith.truncf %23 : vector<128x256xf32> to vector<128x256xbf16>
    %c0_14 = arith.constant 0 : index
    %c0_15 = arith.constant 0 : index
    %25 = vector.load %arg6[%c0_14, %c0_15] : memref<8x256xbf16, #tpu.memory_space<vmem>>, vector<8x256xbf16>
    %cst_16 = arith.constant dense<0.000000e+00> : vector<8x128xf32>
    %26 = tpu.matmul %25, %24, %cst_16 {dimension_numbers = #tpu.dot_dimension_numbers<[1], [1], [0], [0], [0, 0, 1, 0], [], []>} : vector<8x256xbf16>, vector<128x256xbf16>, vector<8x128xf32> -> vector<8x128xf32>
    %c0_17 = arith.constant 0 : index
    %c0_18 = arith.constant 0 : index
    %27 = vector.load %arg7[%c0_17, %c0_18] : memref<8x1xf32, #tpu.memory_space<vmem>>, vector<8x1xf32>
    %28 = vector.broadcast %27 : vector<8x1xf32> to vector<8x128xf32>
    %29 = arith.addf %26, %28 : vector<8x128xf32>
    %c0_19 = arith.constant 0 : index
    %c0_20 = arith.constant 0 : index
    %30 = vector.load %arg9[%c0_19, %c0_20] : memref<8x128xf32, #tpu.memory_space<vmem>>, vector<8x128xf32>
    tpu.vector_store %arg9[%c0_19, %c0_20], %29 {strides = array<i32>} : memref<8x128xf32, #tpu.memory_space<vmem>>, vector<8x128xf32>,
    return
  }
  func.func @transform_0(%arg0: i32) -> (i32, i32) {
    %c0_i32 = arith.constant 0 : i32
    %c0_i32_0 = arith.constant 0 : i32
    return %arg0, %c0_i32 : i32, i32
  }
  func.func @transform_1(%arg0: i32) -> (i32, i32) {
    %c0_i32 = arith.constant 0 : i32
    %c0_i32_0 = arith.constant 0 : i32
    %c0_i32_1 = arith.constant 0 : i32
    return %c0_i32, %c0_i32_0 : i32, i32
  }
  func.func @transform_2(%arg0: i32) -> (i32, i32) {
    %c0_i32 = arith.constant 0 : i32
    %c0_i32_0 = arith.constant 0 : i32
    %c0_i32_1 = arith.constant 0 : i32
    return %c0_i32, %c0_i32_0 : i32, i32
  }
  func.func @transform_3(%arg0: i32) -> (i32, i32) {
    %c0_i32 = arith.constant 0 : i32
    %c0_i32_0 = arith.constant 0 : i32
    %c0_i32_1 = arith.constant 0 : i32
    return %c0_i32, %c0_i32_0 : i32, i32
  }
  func.func @transform_4(%arg0: i32) -> (i32, i32) {
    %c0_i32 = arith.constant 0 : i32
    %c0_i32_0 = arith.constant 0 : i32
    %c0_i32_1 = arith.constant 0 : i32
    return %c0_i32, %c0_i32_0 : i32, i32
  }
  func.func @transform_5(%arg0: i32) -> (i32, i32) {
    %c0_i32 = arith.constant 0 : i32
    %c0_i32_0 = arith.constant 0 : i32
    %c0_i32_1 = arith.constant 0 : i32
    return %c0_i32, %c0_i32_0 : i32, i32
  }
  func.func @transform_6(%arg0: i32) -> (i32, i32) {
    %c0_i32 = arith.constant 0 : i32
    %c0_i32_0 = arith.constant 0 : i32
    %c0_i32_1 = arith.constant 0 : i32
    return %c0_i32, %c0_i32_0 : i32, i32
  }
  func.func @transform_7(%arg0: i32) -> (i32, i32) {
    %c0_i32 = arith.constant 0 : i32
    %c0_i32_0 = arith.constant 0 : i32
    return %arg0, %c0_i32 : i32, i32
  }
  func.func @transform_8(%arg0: i32) -> (i32, i32) {
    %c0_i32 = arith.constant 0 : i32
    %c0_i32_0 = arith.constant 0 : i32
    return %c0_i32, %arg0 : i32, i32
  }
}

</mosaic_0001>

<bundles_post_ra>
// kernel: tpu_custom_call.1
= control target key start
LH: loop header
LB: loop body
LE: loop exit
PB: predicated region body
PF: predicated region fallthrough
CT: control target
= control target key end

     0   :  { %14 = vsyncpa [#allocation3], 0  ;;  %s4435_s0 = inlined_call_operand.vmem [shape: bf16[256,32], index: 0, kind: input, shape index: {}]   ;;  %s4436_s1 = inlined_call_operand.vmem [shape: bf16[32,512], index: 1, kind: input, shape index: {}]   ;;  %s4437_s2 = inlined_call_operand.vmem [shape: f32[1,512], index: 2, kind: input, shape index: {}]   ;;  %s4438_s3 = inlined_call_operand.hbm [shape: bf16[512,512], index: 3, kind: input, shape index: {}]   ;;  %s4439_s4 = inlined_call_operand.vmem [shape: f32[1,512], index: 4, kind: input, shape index: {}]   ;;  %s4440_s5 = inlined_call_operand.vmem [shape: bf16[8,256], index: 5, kind: input, shape index: {}]   ;;  %s4441_s6 = inlined_call_operand.vmem [shape: f32[8,1], index: 6, kind: input, shape index: {}]   ;;  %s4442_s7 = inlined_call_operand.hbm [shape: bf16[256,512], index: 7, kind: output, shape index: {0}]   ;;  %s4443_s8 = inlined_call_operand.hbm [shape: f32[8,256], index: 8, kind: output, shape index: {1}]  }
   0x1   :  { %15 = vsyncpa [#allocation4], 0 }
   0x2   :  { %17 = vsyncpa [#allocation4 + $0x1], 0 }
   0x3   :  { %18 = vsyncpa [#allocation7], 0 }
   0x4   :  { %20 = vsyncpa [#allocation7 + $0x1], 0  ;;  %s3627_s27 = smov 0   ;;  %s3629_s28 = smov 0  }
   0x5   :  { %s3631_s29 = smov 0   ;;  %s3633_s30 = smov 0  }
   0x6 LB: > { %s3648_s9 = sadd.s32 4294967295, %s3572_s30   ;;  %s2707_s10 = sadd.s32 4294967294, %s3572_s30   ;;  %s3572_s30 = sphi %s3633_s30, %s4451_s30   ;;  %s3568_s29 = sphi %s3631_s29, %s4450_s29   ;;  %s3564_s28 = sphi %s3629_s28, %s4449_s28   ;;  %s3560_s27 = sphi %s3627_s27, %s4448_s27  }
   0x7   : > { %s3652_s11 = sadd.s32 1, %s3572_s30   ;;  %s185_s12 = sadd.s32 1, %s3568_s29 }
   0x8   : > { %s182_s13 = ssub.s32 %s3572_s30, %s3652_s11  ;;  %p195_p0 = scmp.ne.s32.totalorder %s3568_s29, %s3564_s28 }
   0x9   : > { %p183_p1 = scmp.eq.s32.totalorder %s182_s13, 0  ;;  %p196_p2 = scmp.eq.s32.totalorder %s3648_s9, 1 }
   0xa   : > { %p201_p3 = scmp.ne.s32.totalorder %s3564_s28, %s3560_s27  ;;  %p202_p4 = scmp.eq.s32.totalorder %s2707_s10, 1 }
   0xb   : > { %s3663_s14 = scalar_select %p183_p1, %s3568_s29, %s185_s12  }
   0xc   : > { %p3665_p5 = por %p196_p2, %p195_p0  ;;  %p3669_p6 = por %p202_p4, %p201_p3 }
   0xd   : > { %p2708_p7 = scmp.ge.s32.totalorder %s3572_s30, 1  ;;  %p235_p8 = scmp.lt.s32.totalorder %s3572_s30, 3 }
   0xe   : > { %s4445_s16 = scalar_select %p3669_p6, 1, 0 }
   0xf   : > { %p3004_p9 = scmp.eq.s32.totalorder %s3648_s9, 0  ;;  %p3676_p10 = pnand %p2708_p7, %p235_p8 }
  0x10   : > { %s3574_s18 = smov [#allocation2]  }
  0x11   : > { %s253_s19 = sshll.u32 %s3574_s18, 4  ;;  %p2993_p11 = pneg %p3676_p10  ;;  %s254_s19 = int_to_ptr.vmem [resolvable:$true] %s253_s19 }
  0x12   : > { %s3463_s20 = scalar_lea.vmem %s254_s19, 16384  ;;  %p3471_p3 = scmp.lt.s32.totalorder %s254_s19, %s254_s19 }
  0x13   : > { %p2994_p12 = pnand %p3004_p9, %p2993_p11  ;;  %p3464_p0 = scmp.ne.s32.totalorder %s254_s19, %s3463_s20 }
  0x14   : > { %p3472_p4 = scmp.lt.s32.totalorder %s3463_s20, %s3463_s20 }
  0x15   : > { %p3454_p13 = pneg %p2994_p12 }
  0x16   : > { %p3473_p6 = por %p3472_p4, %p3471_p3 }
  0x17   : > { %p3466_p1 = pnand %p3464_p0, %p3454_p13 }
  0x19   : > { %p3467_p2 = pneg %p3466_p1 }
  0x1b   : > { %p3474_p7 = pnand %p3473_p6, %p3467_p2 }
  0x1d   : > { %3477 = shalt.err (!%p3474_p7)
}
  0x1e   : > { %s3575_s21 = smov 256   ;;  %s3576_s22 = smov 16  }
  0x1f   : > { %2996 = dma.hbm_to_vmem [thread:$0]  (!%p2994_p12), %s4438_s3, 16384, %s254_s19, [#allocation3], %s3575_s21, %s3575_s21, %s3576_s22  }
  0x20   : > { %287 = sbr.rel (%p3676_p10) target bundleno = 868 (0x364), region = 48 }
  0x25   : > { %3547 = dma.done.wait (%p3004_p9), [#allocation3], 16384  }
  0x26   : > { %3549 = vsyncadd (%p3004_p9), [#allocation3], 4294950912  ;;  %s2715_s25 = sshll.u32 %s3648_s9, 4  ;;  %v3577_v0 = vmov 0   ;;  %v3046_v1 = vld [vmem:[%s4436_s1 + $0x24] ss:$16 sps:$4 sm:$0xff]  }
  0x27   : > { %517 = vmatprep.mubr.bf16.mxu0 %v3577_v0  ;;  %630 = vmatprep.mubr.bf16.mxu1 %v3577_v0  ;;  %p327_p6 = scmp.lt.s32.totalorder %s2715_s25, 31  ;;  %v3048_v2 = vld [vmem:[%s4436_s1 + $0x2c] ss:$16 sps:$4 sm:$0xff]   ;;  %v3050_v3 = vld [vmem:[%s4436_s1 + $0x20] ss:$16 sps:$4 sm:$0xff]   ;;  %vm460_vm0 = vcmask 261120  }
  0x28   : > { %3045 = vset.pattern.permute.xlu0 %v3577_v0  ;;  %497 = vmatprep.subr.bf16.mxu0 %v3046_v1  ;;  %v3051_v4 = vld [vmem:[%s4436_s1 + $0x28] ss:$16 sps:$4 sm:$0xff]   ;;  %v3052_v5 = vld [vmem:[%s4436_s1 + $0x4] ss:$16 sps:$4 sm:$0xff]   ;;  %v3054_v6 = vld [vmem:[%s4436_s1 + $0xc] ss:$16 sps:$4 sm:$0xff]  }
  0x29   : > { %s4453_s25 = smov (!%p327_p6, %s2715_s25), 31  ;;  %610 = vmatprep.subr.bf16.mxu1 %v3048_v2  ;;  %498 = vmatpush1.bf16.msra.mxu0 %v3050_v3  ;;  %v3056_v7 = vld [vmem:[%s4436_s1] ss:$16 sps:$4 sm:$0xff]   ;;  %v3057_v8 = vld [vmem:[%s4436_s1 + $0x8] ss:$16 sps:$4 sm:$0xff]   ;;  %s3790_s22 = sand.u32 1, %s3564_s28  }
  0x2a   : > { %s2716_s17 = sshll.u32 %s4453_s25, 2  ;;  %611 = vmatpush1.bf16.msra.mxu1 %v3051_v4  ;;  %499 = vmatprep.subr.bf16.mxu0 %v3052_v5  ;;  %v3066_v11 = vld [vmem:[#allocation2 + $0xe0] ss:$16 sps:$4 sm:$0xff]   ;;  %v3068_v12 = vld [vmem:[#allocation2 + $0xe4] ss:$16 sps:$4 sm:$0xff]   ;;  %s2713_s23 = sshll.u32 %s3790_s22, 8 }
  0x2b   : > { %s3721_s18 = scalar_lea.vmem %s4435_s0, %s2716_s17  ;;  %612 = vmatprep.subr.bf16.mxu1 %v3054_v6  ;;  %v3069_v13 = vld [vmem:[#allocation2 + $0x2e0] ss:$16 sps:$4 sm:$0xff]   ;;  %v3071_v14 = vld [vmem:[#allocation2 + $0x2e4] ss:$16 sps:$4 sm:$0xff]   ;;  %s3801_s24 = scalar_lea.vmem [#allocation5], %s2713_s23 }
  0x2c   : > { %v3058_v9 = vld [vmem:[%s3721_s18] sm:$0xff]   ;;  %v3059_v10 = vld [vmem:[%s3721_s18 + $0x8] sm:$0xff]   ;;  %v3060_v23 = vld [vmem:[%s3721_s18 + $0x10] sm:$0xff]   ;;  %s2984_s19 = sshll.u32 %s3648_s9, 12  ;;  %s2588_s20 = sshll.u32 %s3801_s24, 4  ;;  %s4363_s20 = int_to_ptr.vmem [resolvable:$true] %s2588_s20 }
  0x2d   : > { %500 = vmatpush1.bf16.msra.mxu0 %v3056_v7  ;;  %v3072_v15 = vld [vmem:[#allocation2 + $0xc0] ss:$16 sps:$4 sm:$0xff]   ;;  %v3074_v16 = vld [vmem:[#allocation2 + $0xc4] ss:$16 sps:$4 sm:$0xff]   ;;  %v3061_v32 = vld [vmem:[%s3721_s18 + $0x18] sm:$0xff]   ;;  %s4361_s23 = scalar_lea.hbm %s4442_s7, %s2984_s19  ;;  %s2569_s26 = scalar_lea.sflag [#allocation4], %s3790_s22 }
  0x2e   : > { %613 = vmatpush1.bf16.msra.mxu1 %v3057_v8  ;;  %1789 = vmatprep.subr.bf16.mxu0 %v3068_v12  ;;  %v3075_v17 = vld [vmem:[#allocation2 + $0x2c0] ss:$16 sps:$4 sm:$0xff]   ;;  %v3077_v18 = vld [vmem:[#allocation2 + $0x2c4] ss:$16 sps:$4 sm:$0xff]   ;;  %v3063_v50 = vld [vmem:[%s3721_s18 + $0x28] sm:$0xff]   ;;  %s3478_s25 = scalar_lea.vmem %s4363_s20, 4096 }
  0x2f   : > { %1902 = vmatprep.subr.bf16.mxu1 %v3071_v14  ;;  %v3080_v19 = vld [vmem:[#allocation2 + $0xa4] ss:$16 sps:$4 sm:$0xff]   ;;  %v3078_v21 = vld [vmem:[#allocation2 + $0xa0] ss:$16 sps:$4 sm:$0xff]   ;;  %v3065_v5 = vld [vmem:[%s3721_s18 + $0x38] sm:$0xff]   ;;  %p3479_p8 = scmp.ne.s32.totalorder %s4363_s20, %s3478_s25  ;;  %s3578_s10 = smov [#allocation5]  }
  0x30   : > { %2733 = vmatmul.mubr.msk.bf16.vlgmr.msra.gmra.mxu0 %vm460_vm0, %v3058_v9  ;;  %v3083_v20 = vld [vmem:[#allocation2 + $0x2a4] ss:$16 sps:$4 sm:$0xff]   ;;  %v3081_v22 = vld [vmem:[#allocation2 + $0x2a0] ss:$16 sps:$4 sm:$0xff]   ;;  %s3482_s12 = sshll.u32 %s3578_s10, 4  ;;  %s3483_s12 = int_to_ptr.vmem [resolvable:$false] %s3482_s12 }
  0x31   : > { %2741 = vmatmul.mubr.msk.bf16.vlgmr.msra.gmra.mxu1 %vm460_vm0, %v3058_v9  ;;  %527 = vmatprep.mubr.bf16.mxu0 %v3577_v0  ;;  %v3086_v24 = vld [vmem:[#allocation2 + $0x84] ss:$16 sps:$4 sm:$0xff]   ;;  %v3084_v26 = vld [vmem:[#allocation2 + $0x80] ss:$16 sps:$4 sm:$0xff]   ;;  %p3480_p9 = pnand %p3479_p8, %p3665_p5  ;;  %p3485_p11 = scmp.lt.s32.totalorder %s4363_s20, %s3483_s12 }
  0x32   : > { %640 = vmatprep.mubr.bf16.mxu1 %v3577_v0  ;;  %1790 = vmatpush1.bf16.msra.mxu0 %v3066_v11  ;;  %v3089_v25 = vld [vmem:[#allocation2 + $0x284] ss:$16 sps:$4 sm:$0xff]   ;;  %v3087_v27 = vld [vmem:[#allocation2 + $0x280] ss:$16 sps:$4 sm:$0xff]  }
  0x33   : > { %1903 = vmatpush1.bf16.msra.mxu1 %v3069_v13  ;;  %1791 = vmatprep.subr.bf16.mxu0 %v3074_v16  ;;  %v3092_v28 = vld [vmem:[#allocation2 + $0x64] ss:$16 sps:$4 sm:$0xff]   ;;  %v3090_v30 = vld [vmem:[#allocation2 + $0x60] ss:$16 sps:$4 sm:$0xff]   ;;  %p3481_p10 = pneg %p3480_p9 }
  0x34   : > { %1904 = vmatprep.subr.bf16.mxu1 %v3077_v18  ;;  %v3095_v29 = vld [vmem:[#allocation2 + $0x264] ss:$16 sps:$4 sm:$0xff]   ;;  %v3093_v31 = vld [vmem:[#allocation2 + $0x260] ss:$16 sps:$4 sm:$0xff]   ;;  %v3167_v18 = vld [vmem:[#allocation2 + $0x2ec] ss:$16 sps:$4 sm:$0xff]  }
  0x35   : > { %v3098_v33 = vld [vmem:[#allocation2 + $0x44] ss:$16 sps:$4 sm:$0xff]   ;;  %v3096_v35 = vld [vmem:[#allocation2 + $0x40] ss:$16 sps:$4 sm:$0xff]  }
  0x36   : > { %1792 = vmatpush1.bf16.msra.mxu0 %v3072_v15  ;;  %v3101_v34 = vld [vmem:[#allocation2 + $0x244] ss:$16 sps:$4 sm:$0xff]   ;;  %v3099_v36 = vld [vmem:[#allocation2 + $0x240] ss:$16 sps:$4 sm:$0xff]  }
  0x37   : > { %1905 = vmatpush1.bf16.msra.mxu1 %v3075_v17  ;;  %1793 = vmatprep.subr.bf16.mxu0 %v3080_v19  ;;  %v3104_v37 = vld [vmem:[#allocation2 + $0x24] ss:$16 sps:$4 sm:$0xff]   ;;  %v3102_v39 = vld [vmem:[#allocation2 + $0x20] ss:$16 sps:$4 sm:$0xff]   ;;  %v3164_v17 = vld [vmem:[#allocation2 + $0xec] ss:$16 sps:$4 sm:$0xff]   ;;  %v360_v19 = vlaneseq }
  0x38   : > { %2734 = vmatmul.mubr.msk.bf16.gmra.mxu0 %vm460_vm0, %v3059_v10  ;;  %1906 = vmatprep.subr.bf16.mxu1 %v3083_v20  ;;  %v3107_v38 = vld [vmem:[#allocation2 + $0x224] ss:$16 sps:$4 sm:$0xff]   ;;  %v3105_v40 = vld [vmem:[#allocation2 + $0x220] ss:$16 sps:$4 sm:$0xff]  }
  0x39   : > { %2742 = vmatmul.mubr.msk.bf16.gmra.mxu1 %vm460_vm0, %v3059_v10  ;;  %537 = vmatprep.mubr.bf16.mxu0 %v3577_v0  ;;  %v3062_v41 = vld [vmem:[%s3721_s18 + $0x20] sm:$0xff]   ;;  %v3064_v59 = vld [vmem:[%s3721_s18 + $0x30] sm:$0xff]   ;;  %v3764_v20 = vshrl.u32 %v360_v19, 7  ;;  %v3173_v19 = vld [vmem:[#allocation2 + $0x2cc] ss:$16 sps:$4 sm:$0xff]  }
  0x3a   : > { %650 = vmatprep.mubr.bf16.mxu1 %v3577_v0  ;;  %1794 = vmatpush1.bf16.msra.mxu0 %v3078_v21  ;;  %v3110_v42 = vld [vmem:[#allocation2 + $0x4] ss:$16 sps:$4 sm:$0xff]   ;;  %v3108_v44 = vld [vmem:[#allocation2] ss:$16 sps:$4 sm:$0xff]  }
  0x3b   : > { %1907 = vmatpush1.bf16.msra.mxu1 %v3081_v22  ;;  %1795 = vmatprep.subr.bf16.mxu0 %v3086_v24  ;;  %v3113_v43 = vld [vmem:[#allocation2 + $0x204] ss:$16 sps:$4 sm:$0xff]   ;;  %v3111_v45 = vld [vmem:[#allocation2 + $0x200] ss:$16 sps:$4 sm:$0xff]   ;;  %v362_v21 = vsub.s32 0, %v3764_v20  ;;  %v370_v22 = vsub.s32 2, %v3764_v20 }
  0x3c   : > { %1908 = vmatprep.subr.bf16.mxu1 %v3089_v25  ;;  %v3116_v46 = vld [vmem:[#allocation2 + $0x1e4] ss:$16 sps:$4 sm:$0xff]   ;;  %v3114_v48 = vld [vmem:[#allocation2 + $0x1e0] ss:$16 sps:$4 sm:$0xff]   ;;  %v366_v24 = vsub.s32 1, %v3764_v20  ;;  %v374_v25 = vsub.s32 3, %v3764_v20 }
  0x3d   : > { %v3119_v47 = vld [vmem:[#allocation2 + $0x3e4] ss:$16 sps:$4 sm:$0xff]   ;;  %v3117_v49 = vld [vmem:[#allocation2 + $0x3e0] ss:$16 sps:$4 sm:$0xff]  }
  0x3e   : > { %1796 = vmatpush1.bf16.msra.mxu0 %v3084_v26  ;;  %v3122_v51 = vld [vmem:[#allocation2 + $0x1c4] ss:$16 sps:$4 sm:$0xff]   ;;  %v3120_v52 = vld [vmem:[#allocation2 + $0x1c0] ss:$16 sps:$4 sm:$0xff]  }
  0x3f   : > { %1909 = vmatpush1.bf16.msra.mxu1 %v3087_v27  ;;  %1797 = vmatprep.subr.bf16.mxu0 %v3092_v28  ;;  %v3123_v53 = vld [vmem:[#allocation2 + $0x3c0] ss:$16 sps:$4 sm:$0xff]   ;;  %v3125_v54 = vld [vmem:[#allocation2 + $0x3c4] ss:$16 sps:$4 sm:$0xff]  }
  0x40   : > { %2735 = vmatmul.mubr.msk.bf16.gmra.mxu0 %vm460_vm0, %v3060_v23  ;;  %1910 = vmatprep.subr.bf16.mxu1 %v3095_v29  ;;  %v3128_v55 = vld [vmem:[#allocation2 + $0x1a4] ss:$16 sps:$4 sm:$0xff]   ;;  %v3126_v57 = vld [vmem:[#allocation2 + $0x1a0] ss:$16 sps:$4 sm:$0xff]  }
  0x41   : > { %2743 = vmatmul.mubr.msk.bf16.gmra.mxu1 %vm460_vm0, %v3060_v23  ;;  %547 = vmatprep.mubr.bf16.mxu0 %v3577_v0  ;;  %v3131_v56 = vld [vmem:[#allocation2 + $0x3a4] ss:$16 sps:$4 sm:$0xff]   ;;  %v3129_v58 = vld [vmem:[#allocation2 + $0x3a0] ss:$16 sps:$4 sm:$0xff]  }
  0x42   : > { %660 = vmatprep.mubr.bf16.mxu1 %v3577_v0  ;;  %1798 = vmatpush1.bf16.msra.mxu0 %v3090_v30  ;;  %v3134_v60 = vld [vmem:[#allocation2 + $0x184] ss:$16 sps:$4 sm:$0xff]   ;;  %v3132_v62 = vld [vmem:[#allocation2 + $0x180] ss:$16 sps:$4 sm:$0xff]  }
  0x43   : > { %1911 = vmatpush1.bf16.msra.mxu1 %v3093_v31  ;;  %1799 = vmatprep.subr.bf16.mxu0 %v3098_v33  ;;  %v3137_v61 = vld [vmem:[#allocation2 + $0x384] ss:$16 sps:$4 sm:$0xff]   ;;  %v3135_v63 = vld [vmem:[#allocation2 + $0x380] ss:$16 sps:$4 sm:$0xff]  }
  0x44   : > { %1912 = vmatprep.subr.bf16.mxu1 %v3101_v34  ;;  %v3140_v1 = vld [vmem:[#allocation2 + $0x164] ss:$16 sps:$4 sm:$0xff]   ;;  %v3138_v3 = vld [vmem:[#allocation2 + $0x160] ss:$16 sps:$4 sm:$0xff]  }
  0x45   : > { %v3143_v2 = vld [vmem:[#allocation2 + $0x364] ss:$16 sps:$4 sm:$0xff]   ;;  %v3141_v4 = vld [vmem:[#allocation2 + $0x360] ss:$16 sps:$4 sm:$0xff]  }
  0x46   : > { %1800 = vmatpush1.bf16.msra.mxu0 %v3096_v35  ;;  %v3146_v6 = vld [vmem:[#allocation2 + $0x144] ss:$16 sps:$4 sm:$0xff]   ;;  %v3144_v8 = vld [vmem:[#allocation2 + $0x140] ss:$16 sps:$4 sm:$0xff]  }
  0x47   : > { %1913 = vmatpush1.bf16.msra.mxu1 %v3099_v36  ;;  %1801 = vmatprep.subr.bf16.mxu0 %v3104_v37  ;;  %v3149_v7 = vld [vmem:[#allocation2 + $0x344] ss:$16 sps:$4 sm:$0xff]   ;;  %v3147_v9 = vld [vmem:[#allocation2 + $0x340] ss:$16 sps:$4 sm:$0xff]  }
  0x48   : > { %2736 = vmatmul.mubr.msk.bf16.gmra.mxu0 %vm460_vm0, %v3061_v32  ;;  %1914 = vmatprep.subr.bf16.mxu1 %v3107_v38  ;;  %v3155_v10 = vld [vmem:[#allocation2 + $0x324] ss:$16 sps:$4 sm:$0xff]   ;;  %v3150_v11 = vld [vmem:[#allocation2 + $0x120] ss:$16 sps:$4 sm:$0xff]  }
  0x49   : > { %2744 = vmatmul.mubr.msk.bf16.gmra.mxu1 %vm460_vm0, %v3061_v32  ;;  %557 = vmatprep.mubr.bf16.mxu0 %v3577_v0  ;;  %v3153_v12 = vld [vmem:[#allocation2 + $0x320] ss:$16 sps:$4 sm:$0xff]   ;;  %v3158_v13 = vld [vmem:[#allocation2 + $0x104] ss:$16 sps:$4 sm:$0xff]  }
  0x4a   : > { %670 = vmatprep.mubr.bf16.mxu1 %v3577_v0  ;;  %1802 = vmatpush1.bf16.msra.mxu0 %v3102_v39  ;;  %v3161_v14 = vld [vmem:[#allocation2 + $0x304] ss:$16 sps:$4 sm:$0xff]   ;;  %v3156_v15 = vld [vmem:[#allocation2 + $0x100] ss:$16 sps:$4 sm:$0xff]  }
  0x4b   : > { %1915 = vmatpush1.bf16.msra.mxu1 %v3105_v40  ;;  %1803 = vmatprep.subr.bf16.mxu0 %v3110_v42  ;;  %v3159_v16 = vld [vmem:[#allocation2 + $0x300] ss:$16 sps:$4 sm:$0xff]  }
  0x4c   : > { %1916 = vmatprep.subr.bf16.mxu1 %v3113_v43  ;;  %v358_v23 = vld [vmem:[%s4437_s2] sm:$0xf] }
  0x4d   : > { %v3775_v26 = vrot.slane %v358_v23, %v362_v21  ;;  %v3779_v27 = vrot.slane %v358_v23, %v370_v22  ;;  %v3783_v28 = vrot.slane %v358_v23, %v366_v24  ;;  %v3787_v29 = vrot.slane %v358_v23, %v374_v25 }
  0x4e   : > { %1804 = vmatpush1.bf16.msra.mxu0 %v3108_v44 }
  0x4f   : > { %1917 = vmatpush1.bf16.msra.mxu1 %v3111_v45  ;;  %1805 = vmatprep.subr.bf16.mxu0 %v3116_v46 }
  0x50   : > { %2737 = vmatmul.mubr.msk.bf16.gmra.mxu0 %vm460_vm0, %v3062_v41  ;;  %1918 = vmatprep.subr.bf16.mxu1 %v3119_v47 }
  0x51   : > { %2745 = vmatmul.mubr.msk.bf16.gmra.mxu1 %vm460_vm0, %v3062_v41  ;;  %567 = vmatprep.mubr.bf16.mxu0 %v3577_v0 }
  0x52   : > { %680 = vmatprep.mubr.bf16.mxu1 %v3577_v0  ;;  %1806 = vmatpush2.bf16.msra.mxu0 %v3114_v48 }
  0x53   : > { %1919 = vmatpush2.bf16.msra.mxu1 %v3117_v49  ;;  %1807 = vmatprep.subr.bf16.mxu0 %v3122_v51 }
  0x54   : > { %1920 = vmatprep.subr.bf16.mxu1 %v3125_v54 }
  0x56   : > { %1808 = vmatpush2.bf16.msra.mxu0 %v3120_v52 }
  0x57   : > { %1921 = vmatpush2.bf16.msra.mxu1 %v3123_v53  ;;  %1809 = vmatprep.subr.bf16.mxu0 %v3128_v55 }
  0x58   : > { %2738 = vmatmul.mubr.msk.bf16.gmra.mxu0 %vm460_vm0, %v3063_v50  ;;  %1922 = vmatprep.subr.bf16.mxu1 %v3131_v56 }
  0x59   : > { %2746 = vmatmul.mubr.msk.bf16.gmra.mxu1 %vm460_vm0, %v3063_v50  ;;  %577 = vmatprep.mubr.bf16.mxu0 %v3577_v0 }
  0x5a   : > { %690 = vmatprep.mubr.bf16.mxu1 %v3577_v0  ;;  %1810 = vmatpush2.bf16.msra.mxu0 %v3126_v57 }
  0x5b   : > { %1923 = vmatpush2.bf16.msra.mxu1 %v3129_v58  ;;  %1811 = vmatprep.subr.bf16.mxu0 %v3134_v60 }
  0x5c   : > { %1924 = vmatprep.subr.bf16.mxu1 %v3137_v61 }
  0x5e   : > { %1812 = vmatpush2.bf16.msra.mxu0 %v3132_v62 }
  0x5f   : > { %1925 = vmatpush2.bf16.msra.mxu1 %v3135_v63  ;;  %1813 = vmatprep.subr.bf16.mxu0 %v3140_v1 }
  0x60   : > { %2739 = vmatmul.mubr.msk.bf16.gmra.mxu0 %vm460_vm0, %v3064_v59  ;;  %1926 = vmatprep.subr.bf16.mxu1 %v3143_v2 }
  0x61   : > { %2747 = vmatmul.mubr.msk.bf16.gmra.mxu1 %vm460_vm0, %v3064_v59  ;;  %587 = vmatprep.mubr.bf16.mxu0 %v3577_v0 }
  0x62   : > { %700 = vmatprep.mubr.bf16.mxu1 %v3577_v0  ;;  %1814 = vmatpush2.bf16.msra.mxu0 %v3138_v3  ;;  %v3152_v0 = vld [vmem:[#allocation2 + $0x124] ss:$16 sps:$4 sm:$0xff]  }
  0x63   : > { %1927 = vmatpush2.bf16.msra.mxu1 %v3141_v4  ;;  %1815 = vmatprep.subr.bf16.mxu0 %v3146_v6 }
  0x64   : > { %1928 = vmatprep.subr.bf16.mxu1 %v3149_v7 }
  0x66   : > { %1816 = vmatpush2.bf16.msra.mxu0 %v3144_v8 }
  0x67   : > { %1929 = vmatpush2.bf16.msra.mxu1 %v3147_v9  ;;  %1817 = vmatprep.subr.bf16.mxu0 %v3152_v0 }
  0x68   : > { %2740 = vmatmul.mubr.msk.bf16.gmra.mxu0 %vm460_vm0, %v3065_v5  ;;  %1930 = vmatprep.subr.bf16.mxu1 %v3155_v10  ;;  %v3162_v10 = vld [vmem:[#allocation2 + $0xe8] ss:$16 sps:$4 sm:$0xff]  }
  0x69   : > { %2748 = vmatmul.mubr.msk.bf16.gmra.mxu1 %vm460_vm0, %v3065_v5 }
  0x6a   : > { %1818 = vmatpush2.bf16.msra.mxu0 %v3150_v11  ;;  %v3165_v11 = vld [vmem:[#allocation2 + $0x2e8] ss:$16 sps:$4 sm:$0xff]  }
  0x6b   : > { %1931 = vmatpush2.bf16.msra.mxu1 %v3153_v12  ;;  %1819 = vmatprep.subr.bf16.mxu0 %v3158_v13 }
  0x6c   : > { %1932 = vmatprep.subr.bf16.mxu1 %v3161_v14 }
  0x6e   : > { %1820 = vmatpush2.bf16.msra.mxu0 %v3156_v15 }
  0x6f   : > { %1933 = vmatpush2.bf16.msra.mxu1 %v3159_v16  ;;  %2015 = vmatprep.subr.bf16.mxu0 %v3164_v17  ;;  %v3170_v16 = vld [vmem:[#allocation2 + $0xcc] ss:$16 sps:$4 sm:$0xff]  }
  0x70   : > { %2128 = vmatprep.subr.bf16.mxu1 %v3167_v18 }
  0xf0   : > { %v519_v30 = vpop.f32.mrf.mxu0 }
  0xf1   : > { %v632_v31 = vpop.f32.mrf.mxu1  ;;  %v520_v32 = vadd.f32 %v519_v30, %v3775_v26 }
  0xf2   : > { %v633_v33 = vadd.f32 %v632_v31, %v3779_v27  ;;  %v521_v34 = vpop.f32.mrf.mxu0 }
  0xf3   : > { %v634_v35 = vpop.f32.mrf.mxu1  ;;  %v522_v37 = vadd.f32 %v521_v34, %v3783_v28  ;;  %v711_v39 = vmax.f32 %v520_v32, 0.0 }
  0xf4   : > { %v713_v36 = vmax.f32 %v633_v33, 0.0  ;;  %v635_v38 = vadd.f32 %v634_v35, %v3787_v29  ;;  %v523_v40 = vpop.f32.mrf.mxu0 }
  0xf5   : > { %v636_v41 = vpop.f32.mrf.mxu1  ;;  %v712_v42 = vmax.f32 %v522_v37, 0.0  ;;  %v524_v44 = vadd.f32 %v523_v40, %v3775_v26  ;;  %v3168_v37 = vld [vmem:[#allocation2 + $0xc8] ss:$16 sps:$4 sm:$0xff]  }
  0xf6   : > { %v714_v43 = vmax.f32 %v635_v38, 0.0  ;;  %v637_v45 = vadd.f32 %v636_v41, %v3779_v27  ;;  %v525_v46 = vpop.f32.mrf.mxu0  ;;  %v3171_v40 = vld [vmem:[#allocation2 + $0x2c8] ss:$16 sps:$4 sm:$0xff]   ;;  %v3176_v41 = vld [vmem:[#allocation2 + $0xac] ss:$16 sps:$4 sm:$0xff]  }
  0xf7   : > { %v638_v47 = vpop.f32.mrf.mxu1  ;;  %v2951_v48 = vpack.c.bf16 %v712_v42, %v711_v39  ;;  %v715_v50 = vmax.f32 %v524_v44, 0.0  ;;  %v526_v52 = vadd.f32 %v525_v46, %v3783_v28 }
  0xf8   : > { %v2952_v49 = vpack.c.bf16 %v714_v43, %v713_v36  ;;  %v717_v51 = vmax.f32 %v637_v45, 0.0  ;;  %v639_v53 = vadd.f32 %v638_v47, %v3787_v29  ;;  %v529_v54 = vpop.f32.mrf.mxu0 }
  0xf9   : > { %v642_v55 = vpop.f32.mrf.mxu1  ;;  %967 = vst [vmem:[%s3801_s24] sm:$0xff] %v2951_v48  ;;  %v530_v56 = vadd.f32 %v529_v54, %v3775_v26  ;;  %v3807_v58 = vpack.c.bf16 %v715_v50, %v711_v39  ;;  %v716_v60 = vmax.f32 %v526_v52, 0.0 }
  0xfa   : > { %968 = vst [vmem:[%s3801_s24 + $0x8] sm:$0xff] %v2952_v49  ;;  %v643_v57 = vadd.f32 %v642_v55, %v3779_v27  ;;  %v3809_v59 = vpack.c.bf16 %v717_v51, %v713_v36  ;;  %v718_v61 = vmax.f32 %v639_v53, 0.0  ;;  %v531_v62 = vpop.f32.mrf.mxu0 }
  0xfb   : > { %v644_v63 = vpop.f32.mrf.mxu1  ;;  %v719_v1 = vmax.f32 %v530_v56, 0.0  ;;  %v532_v3 = vadd.f32 %v531_v62, %v3783_v28  ;;  %v3813_v5 = vpack.c.bf16 %v716_v60, %v712_v42  ;;  %v2953_v6 = vpack.c.bf16 %v716_v60, %v715_v50  ;;  %v3174_v60 = vld [vmem:[#allocation2 + $0xa8] ss:$16 sps:$4 sm:$0xff]  }
  0xfc   : > { %v721_v2 = vmax.f32 %v643_v57, 0.0  ;;  %v645_v4 = vadd.f32 %v644_v63, %v3787_v29  ;;  %v3815_v7 = vpack.c.bf16 %v718_v61, %v714_v43  ;;  %v2954_v8 = vpack.c.bf16 %v718_v61, %v717_v51  ;;  %v533_v9 = vpop.f32.mrf.mxu0  ;;  %v3179_v61 = vld [vmem:[#allocation2 + $0x2ac] ss:$16 sps:$4 sm:$0xff]  }
  0xfd   : > { %v646_v0 = vpop.f32.mrf.mxu1  ;;  %v720_v12 = vmax.f32 %v532_v3, 0.0  ;;  %v534_v14 = vadd.f32 %v533_v9, %v3775_v26  ;;  %969 = vst [vmem:[%s3801_s24 + $0x10] sm:$0xff] %v2953_v6  ;;  %1821 = vmatprep.mubr.bf16.mxu0 %v3813_v5  ;;  %v3177_v3 = vld [vmem:[#allocation2 + $0x2a8] ss:$16 sps:$4 sm:$0xff]   ;;  %v3185_v9 = vld [vmem:[#allocation2 + $0x28c] ss:$16 sps:$4 sm:$0xff]  }
  0xfe   : > { %v722_v13 = vmax.f32 %v645_v4, 0.0  ;;  %v647_v15 = vadd.f32 %v646_v0, %v3779_v27  ;;  %970 = vst [vmem:[%s3801_s24 + $0x18] sm:$0xff] %v2954_v8  ;;  %1934 = vmatprep.mubr.bf16.mxu1 %v3815_v7  ;;  %v535_v17 = vpop.f32.mrf.mxu0  ;;  %1822 = vmatmul.mubr.bf16.vlgmr.msra.gmra.mxu0 %v3807_v58  ;;  %v3182_v8 = vld [vmem:[#allocation2 + $0x8c] ss:$16 sps:$4 sm:$0xff]  }
  0xff   : > { %v648_v18 = vpop.f32.mrf.mxu1  ;;  %v2955_v23 = vpack.c.bf16 %v720_v12, %v719_v1  ;;  %v723_v31 = vmax.f32 %v534_v14, 0.0  ;;  %1935 = vmatmul.mubr.bf16.vlgmr.msra.gmra.mxu1 %v3809_v59  ;;  %v536_v33 = vadd.f32 %v535_v17, %v3783_v28  ;;  %2016 = vmatpush1.bf16.msra.mxu0 %v3162_v10  ;;  %v3180_v17 = vld [vmem:[#allocation2 + $0x88] ss:$16 sps:$4 sm:$0xff]  }
 0x100   : > { %v2956_v30 = vpack.c.bf16 %v722_v13, %v721_v2  ;;  %v725_v32 = vmax.f32 %v647_v15, 0.0  ;;  %v649_v34 = vadd.f32 %v648_v18, %v3787_v29  ;;  %2129 = vmatpush1.bf16.msra.mxu1 %v3165_v11  ;;  %v539_v35 = vpop.f32.mrf.mxu0  ;;  %2017 = vmatprep.subr.bf16.mxu0 %v3170_v16 }
 0x101   : > { %v652_v36 = vpop.f32.mrf.mxu1  ;;  %971 = vst [vmem:[%s3801_s24 + $0x20] sm:$0xff] %v2955_v23  ;;  %v540_v38 = vadd.f32 %v539_v35, %v3775_v26  ;;  %v3831_v42 = vpack.c.bf16 %v723_v31, %v719_v1  ;;  %v724_v44 = vmax.f32 %v536_v33, 0.0  ;;  %2130 = vmatprep.subr.bf16.mxu1 %v3173_v19  ;;  %v3183_v23 = vld [vmem:[#allocation2 + $0x288] ss:$16 sps:$4 sm:$0xff]  }
 0x102   : > { %972 = vst [vmem:[%s3801_s24 + $0x28] sm:$0xff] %v2956_v30  ;;  %v653_v39 = vadd.f32 %v652_v36, %v3779_v27  ;;  %v3833_v43 = vpack.c.bf16 %v725_v32, %v721_v2  ;;  %v726_v45 = vmax.f32 %v649_v34, 0.0  ;;  %v541_v46 = vpop.f32.mrf.mxu0  ;;  %v3188_v30 = vld [vmem:[#allocation2 + $0x6c] ss:$16 sps:$4 sm:$0xff]  }
 0x103   : > { %v654_v47 = vpop.f32.mrf.mxu1  ;;  %v727_v48 = vmax.f32 %v540_v38, 0.0  ;;  %v542_v50 = vadd.f32 %v541_v46, %v3783_v28  ;;  %v3837_v52 = vpack.c.bf16 %v724_v44, %v720_v12  ;;  %v2957_v53 = vpack.c.bf16 %v724_v44, %v723_v31  ;;  %2018 = vmatpush1.bf16.msra.mxu0 %v3168_v37 }
 0x104   : > { %v729_v49 = vmax.f32 %v653_v39, 0.0  ;;  %v655_v51 = vadd.f32 %v654_v47, %v3787_v29  ;;  %v3839_v54 = vpack.c.bf16 %v726_v45, %v722_v13  ;;  %v2958_v55 = vpack.c.bf16 %v726_v45, %v725_v32  ;;  %v543_v56 = vpop.f32.mrf.mxu0  ;;  %2131 = vmatpush1.bf16.msra.mxu1 %v3171_v40  ;;  %2019 = vmatprep.subr.bf16.mxu0 %v3176_v41 }
 0x105   : > { %v656_v57 = vpop.f32.mrf.mxu1  ;;  %v728_v62 = vmax.f32 %v542_v50, 0.0  ;;  %v544_v1 = vadd.f32 %v543_v56, %v3775_v26  ;;  %973 = vst [vmem:[%s3801_s24 + $0x30] sm:$0xff] %v2957_v53  ;;  %1831 = vmatprep.mubr.bf16.mxu0 %v3837_v52  ;;  %2132 = vmatprep.subr.bf16.mxu1 %v3179_v61  ;;  %v3191_v50 = vld [vmem:[#allocation2 + $0x26c] ss:$16 sps:$4 sm:$0xff]  }
 0x106   : > { %v730_v63 = vmax.f32 %v655_v51, 0.0  ;;  %v657_v2 = vadd.f32 %v656_v57, %v3779_v27  ;;  %974 = vst [vmem:[%s3801_s24 + $0x38] sm:$0xff] %v2958_v55  ;;  %1944 = vmatprep.mubr.bf16.mxu1 %v3839_v54  ;;  %v545_v4 = vpop.f32.mrf.mxu0  ;;  %1832 = vmatmul.mubr.bf16.gmra.mxu0 %v3831_v42  ;;  %v3189_v57 = vld [vmem:[#allocation2 + $0x268] ss:$16 sps:$4 sm:$0xff]  }
 0x107   : > { %v658_v6 = vpop.f32.mrf.mxu1  ;;  %v2959_v0 = vpack.c.bf16 %v728_v62, %v727_v48  ;;  %v731_v11 = vmax.f32 %v544_v1, 0.0  ;;  %1945 = vmatmul.mubr.bf16.gmra.mxu1 %v3833_v43  ;;  %v546_v13 = vadd.f32 %v545_v4, %v3783_v28  ;;  %2020 = vmatpush1.bf16.msra.mxu0 %v3174_v60 }
 0x108   : > { %v2960_v10 = vpack.c.bf16 %v730_v63, %v729_v49  ;;  %v733_v12 = vmax.f32 %v657_v2, 0.0  ;;  %v659_v14 = vadd.f32 %v658_v6, %v3787_v29  ;;  %v549_v15 = vpop.f32.mrf.mxu0  ;;  %2133 = vmatpush1.bf16.msra.mxu1 %v3177_v3  ;;  %2021 = vmatprep.subr.bf16.mxu0 %v3182_v8 }
 0x109   : > { %v662_v16 = vpop.f32.mrf.mxu1  ;;  %975 = vst [vmem:[%s3801_s24 + $0x40] sm:$0xff] %v2959_v0  ;;  %v550_v18 = vadd.f32 %v549_v15, %v3775_v26  ;;  %v3855_v31 = vpack.c.bf16 %v731_v11, %v727_v48  ;;  %v732_v33 = vmax.f32 %v546_v13, 0.0  ;;  %2134 = vmatprep.subr.bf16.mxu1 %v3185_v9  ;;  %v3195_v13 = vld [vmem:[#allocation2 + $0x248] ss:$16 sps:$4 sm:$0xff]  }
 0x10a   : > { %976 = vst [vmem:[%s3801_s24 + $0x48] sm:$0xff] %v2960_v10  ;;  %v663_v19 = vadd.f32 %v662_v16, %v3779_v27  ;;  %v3857_v32 = vpack.c.bf16 %v733_v12, %v729_v49  ;;  %v734_v34 = vmax.f32 %v659_v14, 0.0  ;;  %v551_v35 = vpop.f32.mrf.mxu0  ;;  %v3186_v49 = vld [vmem:[#allocation2 + $0x68] ss:$16 sps:$4 sm:$0xff]   ;;  %v3200_v14 = vld [vmem:[#allocation2 + $0x2c] ss:$16 sps:$4 sm:$0xff]  }
 0x10b   : > { %v664_v36 = vpop.f32.mrf.mxu1  ;;  %v735_v37 = vmax.f32 %v550_v18, 0.0  ;;  %v552_v39 = vadd.f32 %v551_v35, %v3783_v28  ;;  %v3861_v41 = vpack.c.bf16 %v732_v33, %v728_v62  ;;  %v2961_v44 = vpack.c.bf16 %v732_v33, %v731_v11  ;;  %2022 = vmatpush1.bf16.msra.mxu0 %v3180_v17  ;;  %v3194_v62 = vld [vmem:[#allocation2 + $0x4c] ss:$16 sps:$4 sm:$0xff]   ;;  %v3192_v10 = vld [vmem:[#allocation2 + $0x48] ss:$16 sps:$4 sm:$0xff]  }
 0x10c   : > { %v737_v38 = vmax.f32 %v663_v19, 0.0  ;;  %v665_v40 = vadd.f32 %v664_v36, %v3787_v29  ;;  %v3863_v45 = vpack.c.bf16 %v734_v34, %v730_v63  ;;  %v2962_v46 = vpack.c.bf16 %v734_v34, %v733_v12  ;;  %v553_v47 = vpop.f32.mrf.mxu0  ;;  %2135 = vmatpush1.bf16.msra.mxu1 %v3183_v23  ;;  %2023 = vmatprep.subr.bf16.mxu0 %v3188_v30  ;;  %v3197_v63 = vld [vmem:[#allocation2 + $0x24c] ss:$16 sps:$4 sm:$0xff]  }
 0x10d   : > { %v666_v48 = vpop.f32.mrf.mxu1  ;;  %v736_v51 = vmax.f32 %v552_v39, 0.0  ;;  %v554_v55 = vadd.f32 %v553_v47, %v3775_v26  ;;  %977 = vst [vmem:[%s3801_s24 + $0x50] sm:$0xff] %v2961_v44  ;;  %1841 = vmatprep.mubr.bf16.mxu0 %v3861_v41  ;;  %2136 = vmatprep.subr.bf16.mxu1 %v3191_v50  ;;  %v3203_v47 = vld [vmem:[#allocation2 + $0x22c] ss:$16 sps:$4 sm:$0xff]  }
 0x10e   : > { %v738_v53 = vmax.f32 %v665_v40, 0.0  ;;  %v667_v56 = vadd.f32 %v666_v48, %v3779_v27  ;;  %978 = vst [vmem:[%s3801_s24 + $0x58] sm:$0xff] %v2962_v46  ;;  %1954 = vmatprep.mubr.bf16.mxu1 %v3863_v45  ;;  %v555_v60 = vpop.f32.mrf.mxu0  ;;  %1842 = vmatmul.mubr.bf16.gmra.mxu0 %v3855_v31  ;;  %v3198_v46 = vld [vmem:[#allocation2 + $0x28] ss:$16 sps:$4 sm:$0xff]  }
 0x10f   : > { %v668_v61 = vpop.f32.mrf.mxu1  ;;  %v2963_v1 = vpack.c.bf16 %v736_v51, %v735_v37  ;;  %v739_v3 = vmax.f32 %v554_v55, 0.0  ;;  %1955 = vmatmul.mubr.bf16.gmra.mxu1 %v3857_v32  ;;  %v556_v6 = vadd.f32 %v555_v60, %v3783_v28  ;;  %2024 = vmatpush1.bf16.msra.mxu0 %v3186_v49  ;;  %v3209_v60 = vld [vmem:[#allocation2 + $0x20c] ss:$16 sps:$4 sm:$0xff]  }
 0x110   : > { %v2964_v2 = vpack.c.bf16 %v738_v53, %v737_v38  ;;  %v741_v4 = vmax.f32 %v667_v56, 0.0  ;;  %v669_v8 = vadd.f32 %v668_v61, %v3787_v29  ;;  %v559_v9 = vpop.f32.mrf.mxu0  ;;  %2137 = vmatpush1.bf16.msra.mxu1 %v3189_v57  ;;  %2025 = vmatprep.subr.bf16.mxu0 %v3194_v62  ;;  %v3206_v57 = vld [vmem:[#allocation2 + $0xc] ss:$16 sps:$4 sm:$0xff]  }
 0x111   : > { %v672_v0 = vpop.f32.mrf.mxu1  ;;  %979 = vst [vmem:[%s3801_s24 + $0x60] sm:$0xff] %v2963_v1  ;;  %v560_v11 = vadd.f32 %v559_v9, %v3775_v26  ;;  %v3879_v15 = vpack.c.bf16 %v739_v3, %v735_v37  ;;  %v740_v17 = vmax.f32 %v556_v6, 0.0  ;;  %2138 = vmatprep.subr.bf16.mxu1 %v3197_v63 }
 0x112   : > { %980 = vst [vmem:[%s3801_s24 + $0x68] sm:$0xff] %v2964_v2  ;;  %v673_v12 = vadd.f32 %v672_v0, %v3779_v27  ;;  %v3881_v16 = vpack.c.bf16 %v741_v4, %v737_v38  ;;  %v742_v18 = vmax.f32 %v669_v8, 0.0  ;;  %v561_v19 = vpop.f32.mrf.mxu0  ;;  %v3204_v8 = vld [vmem:[#allocation2 + $0x8] ss:$16 sps:$4 sm:$0xff]  }
 0x113   : > { %v674_v23 = vpop.f32.mrf.mxu1  ;;  %v743_v30 = vmax.f32 %v560_v11, 0.0  ;;  %v562_v34 = vadd.f32 %v561_v19, %v3783_v28  ;;  %v3885_v36 = vpack.c.bf16 %v740_v17, %v736_v51  ;;  %v2965_v39 = vpack.c.bf16 %v740_v17, %v739_v3  ;;  %2026 = vmatpush1.bf16.msra.mxu0 %v3192_v10  ;;  %v3201_v51 = vld [vmem:[#allocation2 + $0x228] ss:$16 sps:$4 sm:$0xff]   ;;  %v3212_v11 = vld [vmem:[#allocation2 + $0x1ec] ss:$16 sps:$4 sm:$0xff]  }
 0x114   : > { %v745_v33 = vmax.f32 %v673_v12, 0.0  ;;  %v675_v35 = vadd.f32 %v674_v23, %v3787_v29  ;;  %v3887_v37 = vpack.c.bf16 %v742_v18, %v738_v53  ;;  %v2966_v38 = vpack.c.bf16 %v742_v18, %v741_v4  ;;  %v563_v40 = vpop.f32.mrf.mxu0  ;;  %2139 = vmatpush1.bf16.msra.mxu1 %v3195_v13  ;;  %2027 = vmatprep.subr.bf16.mxu0 %v3200_v14  ;;  %v3207_v10 = vld [vmem:[#allocation2 + $0x208] ss:$16 sps:$4 sm:$0xff]  }
 0x115   : > { %v676_v44 = vpop.f32.mrf.mxu1  ;;  %v744_v48 = vmax.f32 %v562_v34, 0.0  ;;  %v564_v50 = vadd.f32 %v563_v40, %v3775_v26  ;;  %981 = vst [vmem:[%s3801_s24 + $0x70] sm:$0xff] %v2965_v39  ;;  %1851 = vmatprep.mubr.bf16.mxu0 %v3885_v36  ;;  %2140 = vmatprep.subr.bf16.mxu1 %v3203_v47  ;;  %v3210_v47 = vld [vmem:[#allocation2 + $0x1e8] ss:$16 sps:$4 sm:$0xff]  }
 0x116   : > { %v746_v49 = vmax.f32 %v675_v35, 0.0  ;;  %v677_v55 = vadd.f32 %v676_v44, %v3779_v27  ;;  %982 = vst [vmem:[%s3801_s24 + $0x78] sm:$0xff] %v2966_v38  ;;  %1964 = vmatprep.mubr.bf16.mxu1 %v3887_v37  ;;  %v565_v53 = vpop.f32.mrf.mxu0  ;;  %1852 = vmatmul.mubr.bf16.gmra.mxu0 %v3879_v15 }
 0x117   : > { %v678_v56 = vpop.f32.mrf.mxu1  ;;  %v2967_v61 = vpack.c.bf16 %v744_v48, %v743_v30  ;;  %v747_v63 = vmax.f32 %v564_v50, 0.0  ;;  %1965 = vmatmul.mubr.bf16.gmra.mxu1 %v3881_v16  ;;  %v566_v2 = vadd.f32 %v565_v53, %v3783_v28  ;;  %2028 = vmatpush1.bf16.msra.mxu0 %v3198_v46  ;;  %v3215_v50 = vld [vmem:[#allocation2 + $0x3ec] ss:$16 sps:$4 sm:$0xff]  }
 0x118   : > { %v2968_v62 = vpack.c.bf16 %v746_v49, %v745_v33  ;;  %v749_v1 = vmax.f32 %v677_v55, 0.0  ;;  %v679_v3 = vadd.f32 %v678_v56, %v3787_v29  ;;  %v569_v4 = vpop.f32.mrf.mxu0  ;;  %2141 = vmatpush1.bf16.msra.mxu1 %v3201_v51  ;;  %2029 = vmatprep.subr.bf16.mxu0 %v3206_v57 }
 0x119   : > { %v682_v6 = vpop.f32.mrf.mxu1  ;;  %983 = vst [vmem:[%s3801_s24 + $0x80] sm:$0xff] %v2967_v61  ;;  %v570_v9 = vadd.f32 %v569_v4, %v3775_v26  ;;  %v3903_v12 = vpack.c.bf16 %v747_v63, %v743_v30  ;;  %v748_v14 = vmax.f32 %v566_v2, 0.0  ;;  %2142 = vmatprep.subr.bf16.mxu1 %v3209_v60  ;;  %v3218_v60 = vld [vmem:[#allocation2 + $0x1cc] ss:$16 sps:$4 sm:$0xff]  }
 0x11a   : > { %984 = vst [vmem:[%s3801_s24 + $0x88] sm:$0xff] %v2968_v62  ;;  %v683_v0 = vadd.f32 %v682_v6, %v3779_v27  ;;  %v3905_v13 = vpack.c.bf16 %v749_v1, %v745_v33  ;;  %v750_v17 = vmax.f32 %v679_v3, 0.0  ;;  %v571_v18 = vpop.f32.mrf.mxu0  ;;  %v3221_v61 = vld [vmem:[#allocation2 + $0x3cc] ss:$16 sps:$4 sm:$0xff]  }
 0x11b   : > { %v684_v19 = vpop.f32.mrf.mxu1  ;;  %v751_v23 = vmax.f32 %v570_v9, 0.0  ;;  %v572_v35 = vadd.f32 %v571_v18, %v3783_v28  ;;  %v3909_v38 = vpack.c.bf16 %v748_v14, %v744_v48  ;;  %v2969_v40 = vpack.c.bf16 %v748_v14, %v747_v63  ;;  %2030 = vmatpush1.bf16.msra.mxu0 %v3204_v8  ;;  %v3213_v48 = vld [vmem:[#allocation2 + $0x3e8] ss:$16 sps:$4 sm:$0xff]   ;;  %v3224_v14 = vld [vmem:[#allocation2 + $0x1ac] ss:$16 sps:$4 sm:$0xff]  }
 0x11c   : > { %v753_v34 = vmax.f32 %v683_v0, 0.0  ;;  %v685_v39 = vadd.f32 %v684_v19, %v3787_v29  ;;  %v3911_v30 = vpack.c.bf16 %v750_v17, %v746_v49  ;;  %v2970_v33 = vpack.c.bf16 %v750_v17, %v749_v1  ;;  %v573_v44 = vpop.f32.mrf.mxu0  ;;  %2143 = vmatpush1.bf16.msra.mxu1 %v3207_v10  ;;  %2031 = vmatprep.subr.bf16.mxu0 %v3212_v11  ;;  %v3216_v9 = vld [vmem:[#allocation2 + $0x1c8] ss:$16 sps:$4 sm:$0xff]  }
 0x11d   : > { %v686_v46 = vpop.f32.mrf.mxu1  ;;  %v752_v55 = vmax.f32 %v572_v35, 0.0  ;;  %v574_v53 = vadd.f32 %v573_v44, %v3775_v26  ;;  %985 = vst [vmem:[%s3801_s24 + $0x90] sm:$0xff] %v2969_v40  ;;  %1861 = vmatprep.mubr.bf16.mxu0 %v3909_v38  ;;  %2144 = vmatprep.subr.bf16.mxu1 %v3215_v50  ;;  %v3219_v11 = vld [vmem:[#allocation2 + $0x3c8] ss:$16 sps:$4 sm:$0xff]  }
 0x11e   : > { %v754_v51 = vmax.f32 %v685_v39, 0.0  ;;  %v687_v56 = vadd.f32 %v686_v46, %v3779_v27  ;;  %986 = vst [vmem:[%s3801_s24 + $0x98] sm:$0xff] %v2970_v33  ;;  %1974 = vmatprep.mubr.bf16.mxu1 %v3911_v30  ;;  %v575_v49 = vpop.f32.mrf.mxu0  ;;  %1862 = vmatmul.mubr.bf16.gmra.mxu0 %v3903_v12 }
 0x11f   : > { %v688_v57 = vpop.f32.mrf.mxu1  ;;  %v2971_v62 = vpack.c.bf16 %v752_v55, %v751_v23  ;;  %v755_v1 = vmax.f32 %v574_v53, 0.0  ;;  %1975 = vmatmul.mubr.bf16.gmra.mxu1 %v3905_v13  ;;  %v576_v3 = vadd.f32 %v575_v49, %v3783_v28  ;;  %2032 = vmatpush2.bf16.msra.mxu0 %v3210_v47  ;;  %v3222_v49 = vld [vmem:[#allocation2 + $0x1a8] ss:$16 sps:$4 sm:$0xff]  }
 0x120   : > { %v2972_v63 = vpack.c.bf16 %v754_v51, %v753_v34  ;;  %v757_v2 = vmax.f32 %v687_v56, 0.0  ;;  %v689_v4 = vadd.f32 %v688_v57, %v3787_v29  ;;  %v579_v6 = vpop.f32.mrf.mxu0  ;;  %2145 = vmatpush2.bf16.msra.mxu1 %v3213_v48  ;;  %2033 = vmatprep.subr.bf16.mxu0 %v3218_v60  ;;  %v3227_v57 = vld [vmem:[#allocation2 + $0x3ac] ss:$16 sps:$4 sm:$0xff]  }
 0x121   : > { %v692_v8 = vpop.f32.mrf.mxu1  ;;  %987 = vst [vmem:[%s3801_s24 + $0xa0] sm:$0xff] %v2971_v62  ;;  %v580_v0 = vadd.f32 %v579_v6, %v3775_v26  ;;  %v3927_v17 = vpack.c.bf16 %v755_v1, %v751_v23  ;;  %v756_v19 = vmax.f32 %v576_v3, 0.0  ;;  %2146 = vmatprep.subr.bf16.mxu1 %v3221_v61  ;;  %v3233_v3 = vld [vmem:[#allocation2 + $0x38c] ss:$16 sps:$4 sm:$0xff]  }
 0x122   : > { %988 = vst [vmem:[%s3801_s24 + $0xa8] sm:$0xff] %v2972_v63  ;;  %v693_v10 = vadd.f32 %v692_v8, %v3779_v27  ;;  %v3929_v18 = vpack.c.bf16 %v757_v2, %v753_v34  ;;  %v758_v35 = vmax.f32 %v689_v4, 0.0  ;;  %v581_v39 = vpop.f32.mrf.mxu0 }
 0x123   : > { %v694_v40 = vpop.f32.mrf.mxu1  ;;  %v759_v33 = vmax.f32 %v580_v0, 0.0  ;;  %v582_v46 = vadd.f32 %v581_v39, %v3783_v28  ;;  %v3933_v50 = vpack.c.bf16 %v756_v19, %v752_v55  ;;  %v2973_v53 = vpack.c.bf16 %v756_v19, %v755_v1  ;;  %2034 = vmatpush2.bf16.msra.mxu0 %v3216_v9  ;;  %v3225_v55 = vld [vmem:[#allocation2 + $0x3a8] ss:$16 sps:$4 sm:$0xff]  }
 0x124   : > { %v761_v44 = vmax.f32 %v693_v10, 0.0  ;;  %v695_v47 = vadd.f32 %v694_v40, %v3787_v29  ;;  %v3935_v23 = vpack.c.bf16 %v758_v35, %v754_v51  ;;  %v2974_v34 = vpack.c.bf16 %v758_v35, %v757_v2  ;;  %v583_v56 = vpop.f32.mrf.mxu0  ;;  %2147 = vmatpush2.bf16.msra.mxu1 %v3219_v11  ;;  %2035 = vmatprep.subr.bf16.mxu0 %v3224_v14  ;;  %v3230_v2 = vld [vmem:[#allocation2 + $0x18c] ss:$16 sps:$4 sm:$0xff]   ;;  %v3228_v19 = vld [vmem:[#allocation2 + $0x188] ss:$16 sps:$4 sm:$0xff]  }
 0x125   : > { %v696_v48 = vpop.f32.mrf.mxu1  ;;  %v760_v60 = vmax.f32 %v582_v46, 0.0  ;;  %v584_v62 = vadd.f32 %v583_v56, %v3775_v26  ;;  %989 = vst [vmem:[%s3801_s24 + $0xb0] sm:$0xff] %v2973_v53  ;;  %1871 = vmatprep.mubr.bf16.mxu0 %v3933_v50  ;;  %2148 = vmatprep.subr.bf16.mxu1 %v3227_v57  ;;  %v3231_v40 = vld [vmem:[#allocation2 + $0x388] ss:$16 sps:$4 sm:$0xff]   ;;  %v3236_v46 = vld [vmem:[#allocation2 + $0x16c] ss:$16 sps:$4 sm:$0xff]  }
 0x126   : > { %v762_v61 = vmax.f32 %v695_v47, 0.0  ;;  %v697_v63 = vadd.f32 %v696_v48, %v3779_v27  ;;  %990 = vst [vmem:[%s3801_s24 + $0xb8] sm:$0xff] %v2974_v34  ;;  %1984 = vmatprep.mubr.bf16.mxu1 %v3935_v23  ;;  %v585_v51 = vpop.f32.mrf.mxu0  ;;  %1872 = vmatmul.mubr.bf16.gmra.mxu0 %v3927_v17 }
 0x127   : > { %v698_v1 = vpop.f32.mrf.mxu1  ;;  %v2975_v4 = vpack.c.bf16 %v760_v60, %v759_v33  ;;  %v763_v8 = vmax.f32 %v584_v62, 0.0  ;;  %1985 = vmatmul.mubr.bf16.gmra.mxu1 %v3929_v18  ;;  %v586_v0 = vadd.f32 %v585_v51, %v3783_v28  ;;  %2036 = vmatpush2.bf16.msra.mxu0 %v3222_v49 }
 0x128   : > { %v2976_v6 = vpack.c.bf16 %v762_v61, %v761_v44  ;;  %v765_v9 = vmax.f32 %v697_v63, 0.0  ;;  %v699_v10 = vadd.f32 %v698_v1, %v3787_v29  ;;  %v589_v11 = vpop.f32.mrf.mxu0  ;;  %2149 = vmatpush2.bf16.msra.mxu1 %v3225_v55  ;;  %2037 = vmatprep.subr.bf16.mxu0 %v3230_v2 }
 0x129   : > { %v702_v14 = vpop.f32.mrf.mxu1  ;;  %991 = vst [vmem:[%s3801_s24 + $0xc0] sm:$0xff] %v2975_v4  ;;  %v3950_v35 = vadd.f32 %v589_v11, %v3775_v26  ;;  %v3955_v47 = vpack.c.bf16 %v763_v8, %v759_v33  ;;  %v764_v34 = vmax.f32 %v586_v0, 0.0  ;;  %2150 = vmatprep.subr.bf16.mxu1 %v3233_v3  ;;  %v3234_v3 = vld [vmem:[#allocation2 + $0x168] ss:$16 sps:$4 sm:$0xff]  }
 0x12a   : > { %992 = vst [vmem:[%s3801_s24 + $0xc8] sm:$0xff] %v2976_v6  ;;  %v3953_v39 = vadd.f32 %v702_v14, %v3779_v27  ;;  %v3957_v53 = vpack.c.bf16 %v765_v9, %v761_v44  ;;  %v766_v56 = vmax.f32 %v699_v10, 0.0  ;;  %v591_v48 = vpop.f32.mrf.mxu0  ;;  %v3239_v6 = vld [vmem:[#allocation2 + $0x36c] ss:$16 sps:$4 sm:$0xff]  }
 0x12b   : > { %v704_v49 = vpop.f32.mrf.mxu1  ;;  %v767_v57 = vmax.f32 %v3950_v35, 0.0  ;;  %v592_v63 = vadd.f32 %v591_v48, %v3783_v28  ;;  %v3963_v51 = vpack.c.bf16 %v764_v34, %v760_v60  ;;  %v2977_v33 = vpack.c.bf16 %v764_v34, %v763_v8  ;;  %2038 = vmatpush2.bf16.msra.mxu0 %v3228_v19  ;;  %v3237_v60 = vld [vmem:[#allocation2 + $0x368] ss:$16 sps:$4 sm:$0xff]   ;;  %v3242_v8 = vld [vmem:[#allocation2 + $0x14c] ss:$16 sps:$4 sm:$0xff]  }
 0x12c   : > { %v769_v62 = vmax.f32 %v3953_v39, 0.0  ;;  %v705_v55 = vadd.f32 %v704_v49, %v3787_v29  ;;  %v3965_v44 = vpack.c.bf16 %v766_v56, %v762_v61  ;;  %v2978_v1 = vpack.c.bf16 %v766_v56, %v765_v9  ;;  %v593_v4 = vpop.f32.mrf.mxu0  ;;  %2151 = vmatpush2.bf16.msra.mxu1 %v3231_v40  ;;  %2039 = vmatprep.subr.bf16.mxu0 %v3236_v46  ;;  %v3245_v19 = vld [vmem:[#allocation2 + $0x34c] ss:$16 sps:$4 sm:$0xff]   ;;  %v3240_v40 = vld [vmem:[#allocation2 + $0x148] ss:$16 sps:$4 sm:$0xff]  }
 0x12d   : > { %v706_v2 = vpop.f32.mrf.mxu1  ;;  %v768_v0 = vmax.f32 %v592_v63, 0.0  ;;  %v594_v11 = vadd.f32 %v593_v4, %v3775_v26  ;;  %993 = vst [vmem:[%s3801_s24 + $0xd0] sm:$0xff] %v2977_v33  ;;  %1881 = vmatprep.mubr.bf16.mxu0 %v3963_v51  ;;  %2152 = vmatprep.subr.bf16.mxu1 %v3239_v6  ;;  %v3243_v56 = vld [vmem:[#allocation2 + $0x348] ss:$16 sps:$4 sm:$0xff]   ;;  %v3248_v48 = vld [vmem:[#allocation2 + $0x12c] ss:$16 sps:$4 sm:$0xff]  }
 0x12e   : > { %v770_v10 = vmax.f32 %v705_v55, 0.0  ;;  %v707_v14 = vadd.f32 %v706_v2, %v3779_v27  ;;  %994 = vst [vmem:[%s3801_s24 + $0xd8] sm:$0xff] %v2978_v1  ;;  %1994 = vmatprep.mubr.bf16.mxu1 %v3965_v44  ;;  %v595_v61 = vpop.f32.mrf.mxu0  ;;  %1882 = vmatmul.mubr.bf16.gmra.mxu0 %v3955_v47  ;;  %v3246_v1 = vld [vmem:[#allocation2 + $0x128] ss:$16 sps:$4 sm:$0xff]   ;;  %v3251_v4 = vld [vmem:[#allocation2 + $0x32c] ss:$16 sps:$4 sm:$0xff]  }
 0x12f   : > { %v708_v9 = vpop.f32.mrf.mxu1  ;;  %v2979_v35 = vpack.c.bf16 %v768_v0, %v767_v57  ;;  %1995 = vmatmul.mubr.bf16.gmra.mxu1 %v3957_v53  ;;  %v596_v26 = vadd.f32 %v595_v61, %v3783_v28  ;;  %2040 = vmatpush2.bf16.msra.mxu0 %v3234_v3  ;;  %v771_v46 = vmax.f32 %v594_v11, 0.0  ;;  %v3249_v6 = vld [vmem:[#allocation2 + $0x328] ss:$16 sps:$4 sm:$0xff]   ;;  %v3254_v11 = vld [vmem:[#allocation2 + $0x10c] ss:$16 sps:$4 sm:$0xff]  }
 0x130   : > { %v2980_v39 = vpack.c.bf16 %v770_v10, %v769_v62  ;;  %v709_v27 = vadd.f32 %v708_v9, %v3787_v29  ;;  %v773_v34 = vmax.f32 %v707_v14, 0.0  ;;  %2153 = vmatpush2.bf16.msra.mxu1 %v3237_v60  ;;  %2041 = vmatprep.subr.bf16.mxu0 %v3242_v8  ;;  %v3257_v14 = vld [vmem:[#allocation2 + $0x30c] ss:$16 sps:$4 sm:$0xff]  }
 0x131   : > { %995 = vst [vmem:[%s3801_s24 + $0xe0] sm:$0xff] %v2979_v35  ;;  %v772_v49 = vmax.f32 %v596_v26, 0.0  ;;  %2154 = vmatprep.subr.bf16.mxu1 %v3245_v19  ;;  %v803_v2 = vpack.c.bf16 %v771_v46, %v767_v57 }
 0x132   : > { %996 = vst [vmem:[%s3801_s24 + $0xe8] sm:$0xff] %v2980_v39  ;;  %v774_v63 = vmax.f32 %v709_v27, 0.0  ;;  %v805_v3 = vpack.c.bf16 %v773_v34, %v769_v62 }
 0x133   : > { %v804_v55 = vpack.c.bf16 %v772_v49, %v768_v0  ;;  %v2981_v28 = vpack.c.bf16 %v772_v49, %v771_v46  ;;  %2042 = vmatpush2.bf16.msra.mxu0 %v3240_v40  ;;  %v3252_v0 = vld [vmem:[#allocation2 + $0x108] ss:$16 sps:$4 sm:$0xff]  }
 0x134   : > { %v806_v33 = vpack.c.bf16 %v774_v63, %v770_v10  ;;  %v2982_v29 = vpack.c.bf16 %v774_v63, %v773_v34  ;;  %2155 = vmatpush2.bf16.msra.mxu1 %v3243_v56  ;;  %2043 = vmatprep.subr.bf16.mxu0 %v3248_v48  ;;  %v3255_v10 = vld [vmem:[#allocation2 + $0x308] ss:$16 sps:$4 sm:$0xff]  }
 0x135   : > { %997 = vst [vmem:[%s3801_s24 + $0xf0] sm:$0xff] %v2981_v28  ;;  %1891 = vmatprep.mubr.bf16.mxu0 %v804_v55  ;;  %2156 = vmatprep.subr.bf16.mxu1 %v3251_v4 }
 0x136   : > { %998 = vst [vmem:[%s3801_s24 + $0xf8] sm:$0xff] %v2982_v29  ;;  %2004 = vmatprep.mubr.bf16.mxu1 %v806_v33  ;;  %1892 = vmatmul.mubr.bf16.gmra.mxu0 %v803_v2  ;;  %s3484_s24 = scalar_lea.vmem %s3483_s12, 8192 }
 0x137   : > { %2005 = vmatmul.mubr.bf16.gmra.mxu1 %v805_v3  ;;  %2044 = vmatpush2.bf16.msra.mxu0 %v3246_v1  ;;  %p3486_p12 = scmp.lt.s32.totalorder %s3484_s24, %s3478_s25 }
 0x138   : > { %2047 = vmatprep.mubr.bf16.mxu0 %v3813_v5  ;;  %2157 = vmatpush2.bf16.msra.mxu1 %v3249_v6 }
 0x139   : > { %2160 = vmatprep.mubr.bf16.mxu1 %v3815_v7  ;;  %2045 = vmatprep.subr.bf16.mxu0 %v3254_v11  ;;  %p3487_p13 = por %p3486_p12, %p3485_p11 }
 0x13a   : > { %2158 = vmatprep.subr.bf16.mxu1 %v3257_v14 }
 0x13b   : > { %2046 = vmatpush2.bf16.msra.mxu0 %v3252_v0  ;;  %p3488_p0 = pnand %p3487_p13, %p3481_p10 }
 0x13c   : > { %2159 = vmatpush2.bf16.msra.mxu1 %v3255_v10 }
 0x13e   : > { %2048 = vmatmul.mubr.bf16.vlgmr.msra.gmra.mxu0 %v3807_v58  ;;  %v4012_v58 = vld [vmem:[%s4439_s4] sm:$0xf] }
 0x13f   : > { %2161 = vmatmul.mubr.bf16.vlgmr.msra.gmra.mxu1 %v3809_v59  ;;  %2057 = vmatprep.mubr.bf16.mxu0 %v3837_v52  ;;  %v4017_v59 = vrot.slane %v4012_v58, %v362_v21  ;;  %v4022_v5 = vrot.slane %v4012_v58, %v366_v24 }
 0x140   : > { %2170 = vmatprep.mubr.bf16.mxu1 %v3839_v54 }
 0x146   : > { %2058 = vmatmul.mubr.bf16.gmra.mxu0 %v3831_v42 }
 0x147   : > { %2171 = vmatmul.mubr.bf16.gmra.mxu1 %v3833_v43  ;;  %2067 = vmatprep.mubr.bf16.mxu0 %v3861_v41 }
 0x148   : > { %2180 = vmatprep.mubr.bf16.mxu1 %v3863_v45 }
 0x14e   : > { %2068 = vmatmul.mubr.bf16.gmra.mxu0 %v3855_v31 }
 0x14f   : > { %2181 = vmatmul.mubr.bf16.gmra.mxu1 %v3857_v32  ;;  %2077 = vmatprep.mubr.bf16.mxu0 %v3885_v36 }
 0x150   : > { %2190 = vmatprep.mubr.bf16.mxu1 %v3887_v37 }
 0x156   : > { %2078 = vmatmul.mubr.bf16.gmra.mxu0 %v3879_v15 }
 0x157   : > { %2191 = vmatmul.mubr.bf16.gmra.mxu1 %v3881_v16  ;;  %2087 = vmatprep.mubr.bf16.mxu0 %v3909_v38 }
 0x158   : > { %2200 = vmatprep.mubr.bf16.mxu1 %v3911_v30 }
 0x15e   : > { %2088 = vmatmul.mubr.bf16.gmra.mxu0 %v3903_v12 }
 0x15f   : > { %2201 = vmatmul.mubr.bf16.gmra.mxu1 %v3905_v13  ;;  %2097 = vmatprep.mubr.bf16.mxu0 %v3933_v50 }
 0x160   : > { %2210 = vmatprep.mubr.bf16.mxu1 %v3935_v23 }
 0x166   : > { %2098 = vmatmul.mubr.bf16.gmra.mxu0 %v3927_v17 }
 0x167   : > { %2211 = vmatmul.mubr.bf16.gmra.mxu1 %v3929_v18  ;;  %2107 = vmatprep.mubr.bf16.mxu0 %v3963_v51 }
 0x168   : > { %2220 = vmatprep.mubr.bf16.mxu1 %v3965_v44 }
 0x16e   : > { %2108 = vmatmul.mubr.bf16.gmra.mxu0 %v3955_v47 }
 0x16f   : > { %2221 = vmatmul.mubr.bf16.gmra.mxu1 %v3957_v53  ;;  %2117 = vmatprep.mubr.bf16.mxu0 %v804_v55 }
 0x170   : > { %2230 = vmatprep.mubr.bf16.mxu1 %v806_v33 }
 0x176   : > { %2118 = vmatmul.mubr.bf16.gmra.mxu0 %v803_v2 }
 0x177   : > { %2231 = vmatmul.mubr.bf16.gmra.mxu1 %v805_v3 }
 0x1be   : > { %v1823_v7 = vpop.f32.mrf.mxu0 }
 0x1bf   : > { %v1936_v42 = vpop.f32.mrf.mxu1  ;;  %v1824_v43 = vadd.f32 %v1823_v7, %v4017_v59 }
 0x1c0   : > { %v1825_v52 = vpop.f32.mrf.mxu0 }
 0x1c1   : > { %v1938_v54 = vpop.f32.mrf.mxu1  ;;  %v1937_v31 = vadd.f32 %v1936_v42, %v1824_v43  ;;  %v1826_v32 = vadd.f32 %v1825_v52, %v4022_v5 }
 0x1c2   : > { %v1827_v41 = vpop.f32.mrf.mxu0 }
 0x1c3   : > { %v1940_v45 = vpop.f32.mrf.mxu1  ;;  %v1939_v15 = vadd.f32 %v1938_v54, %v1826_v32  ;;  %v1828_v21 = vadd.f32 %v1827_v41, %v4017_v59  ;;  %v2909_v28 = vmul.f32 -1.442695, %v1937_v31 }
 0x1c4   : > { %v1829_v16 = vpop.f32.mrf.mxu0 }
 0x1c5   : > { %v1942_v36 = vpop.f32.mrf.mxu1  ;;  %v1941_v37 = vadd.f32 %v1940_v45, %v1828_v21  ;;  %v1830_v24 = vadd.f32 %v1829_v16, %v4022_v5  ;;  %v2910_v3 = vmul.f32 -1.442695, %v1939_v15  ;;  %3260 = vpow2.f32 %v2909_v28 }
 0x1c6   : > { %v1833_v12 = vpop.f32.mrf.mxu0 }
 0x1c7   : > { %v1946_v13 = vpop.f32.mrf.mxu1  ;;  %v1943_v38 = vadd.f32 %v1942_v36, %v1830_v24  ;;  %v1834_v30 = vadd.f32 %v1833_v12, %v4017_v59  ;;  %v2911_v0 = vmul.f32 -1.442695, %v1941_v37  ;;  %3262 = vpow2.f32 %v2910_v3 }
 0x1c8   : > { %v1835_v17 = vpop.f32.mrf.mxu0 }
 0x1c9   : > { %v1948_v18 = vpop.f32.mrf.mxu1  ;;  %v1947_v50 = vadd.f32 %v1946_v13, %v1834_v30  ;;  %v1836_v23 = vadd.f32 %v1835_v17, %v4022_v5  ;;  %v2912_v43 = vmul.f32 -1.442695, %v1943_v38  ;;  %3264 = vpow2.f32 %v2911_v0 }
 0x1ca   : > { %v1837_v47 = vpop.f32.mrf.mxu0 }
 0x1cb   : > { %v1950_v53 = vpop.f32.mrf.mxu1  ;;  %v1949_v57 = vadd.f32 %v1948_v18, %v1836_v23  ;;  %v1838_v62 = vadd.f32 %v1837_v47, %v4017_v59  ;;  %v2913_v41 = vmul.f32 -1.442695, %v1947_v50  ;;  %3266 = vpow2.f32 %v2912_v43 }
 0x1cc   : > { %v1839_v51 = vpop.f32.mrf.mxu0 }
 0x1cd   : > { %v1952_v44 = vpop.f32.mrf.mxu1  ;;  %v1951_v60 = vadd.f32 %v1950_v53, %v1838_v62  ;;  %v1840_v8 = vadd.f32 %v1839_v51, %v4022_v5  ;;  %v2914_v21 = vmul.f32 -1.442695, %v1949_v57  ;;  %3268 = vpow2.f32 %v2913_v41 }
 0x1ce   : > { %v1843_v61 = vpop.f32.mrf.mxu0 }
 0x1cf   : > { %v1956_v9 = vpop.f32.mrf.mxu1  ;;  %v1953_v19 = vadd.f32 %v1952_v44, %v1840_v8  ;;  %v1844_v35 = vadd.f32 %v1843_v61, %v4017_v59  ;;  %v2915_v37 = vmul.f32 -1.442695, %v1951_v60  ;;  %3270 = vpow2.f32 %v2914_v21 }
 0x1d0   : > { %v1845_v39 = vpop.f32.mrf.mxu0 }
 0x1d1   : > { %v1958_v26 = vpop.f32.mrf.mxu1  ;;  %v1957_v27 = vadd.f32 %v1956_v9, %v1844_v35  ;;  %v1846_v40 = vadd.f32 %v1845_v39, %v4022_v5  ;;  %v2916_v12 = vmul.f32 -1.442695, %v1953_v19  ;;  %3272 = vpow2.f32 %v2915_v37 }
 0x1d2   : > { %v1847_v46 = vpop.f32.mrf.mxu0  ;;  %v3261_v35 = vpop.eup %3260 }
 0x1d3   : > { %v1960_v34 = vpop.f32.mrf.mxu1  ;;  %v1959_v56 = vadd.f32 %v1958_v26, %v1846_v40  ;;  %v1848_v48 = vadd.f32 %v1847_v46, %v4017_v59  ;;  %v2917_v17 = vmul.f32 -1.442695, %v1957_v27  ;;  %3274 = vpow2.f32 %v2916_v12 }
 0x1d4   : > { %v1849_v49 = vpop.f32.mrf.mxu0 }
 0x1d5   : > { %v1962_v63 = vpop.f32.mrf.mxu1  ;;  %v1850_v55 = vadd.f32 %v1849_v49, %v4022_v5  ;;  %v1961_v33 = vadd.f32 %v1960_v34, %v1848_v48  ;;  %v2918_v53 = vmul.f32 -1.442695, %v1959_v56  ;;  %3276 = vpow2.f32 %v2917_v17  ;;  %v3263_v34 = vpop.eup %3262 }
 0x1d6   : > { %v1853_v29 = vpop.f32.mrf.mxu0  ;;  %v2338_v3 = vadd.f32 1.0, %v3263_v34 }
 0x1d7   : > { %v1966_v1 = vpop.f32.mrf.mxu1  ;;  %v1963_v4 = vadd.f32 %v1962_v63, %v1850_v55  ;;  %v1854_v2 = vadd.f32 %v1853_v29, %v4017_v59  ;;  %v2919_v60 = vmul.f32 -1.442695, %v1961_v33  ;;  %3278 = vpow2.f32 %v2918_v53  ;;  %v3265_v33 = vpop.eup %3264 }
 0x1d8   : > { %v1855_v6 = vpop.f32.mrf.mxu0  ;;  %v2337_v63 = vadd.f32 1.0, %v3261_v35 }
 0x1d9   : > { %v1968_v11 = vpop.f32.mrf.mxu1  ;;  %v1967_v14 = vadd.f32 %v1966_v1, %v1854_v2  ;;  %v1856_v10 = vadd.f32 %v1855_v6, %v4022_v5  ;;  %v2920_v39 = vmul.f32 -1.442695, %v1963_v4  ;;  %3280 = vpow2.f32 %v2919_v60  ;;  %v3267_v2 = vpop.eup %3266 }
 0x1da   : > { %v1857_v7 = vpop.f32.mrf.mxu0 }
 0x1db   : > { %v1970_v42 = vpop.f32.mrf.mxu1  ;;  %v1858_v52 = vadd.f32 %v1857_v7, %v4017_v59  ;;  %v1969_v54 = vadd.f32 %v1968_v11, %v1856_v10  ;;  %v2921_v56 = vmul.f32 -1.442695, %v1967_v14  ;;  %3282 = vpow2.f32 %v2920_v39  ;;  %v3269_v7 = vpop.eup %3268 }
 0x1dc   : > { %v1859_v31 = vpop.f32.mrf.mxu0  ;;  %v2341_v37 = vadd.f32 1.0, %v3269_v7 }
 0x1dd   : > { %v1972_v32 = vpop.f32.mrf.mxu1  ;;  %v1971_v45 = vadd.f32 %v1970_v42, %v1858_v52  ;;  %v1860_v15 = vadd.f32 %v1859_v31, %v4022_v5  ;;  %v2922_v29 = vmul.f32 -1.442695, %v1969_v54  ;;  %3284 = vpow2.f32 %v2921_v56  ;;  %v3271_v54 = vpop.eup %3270 }
 0x1de   : > { %v1863_v16 = vpop.f32.mrf.mxu0  ;;  %3286 = vrcp.f32 %v2337_v63  ;;  %v2339_v42 = vadd.f32 1.0, %v3265_v33  ;;  %v2340_v31 = vadd.f32 1.0, %v3267_v2 }
 0x1df   : > { %v1976_v36 = vpop.f32.mrf.mxu1  ;;  %v4040_v24 = vadd.f32 %v1972_v32, %v1860_v15  ;;  %v1864_v13 = vadd.f32 %v1863_v16, %v4017_v59  ;;  %v2923_v14 = vmul.f32 -1.442695, %v1971_v45  ;;  %3288 = vpow2.f32 %v2922_v29  ;;  %v3273_v15 = vpop.eup %3272 }
 0x1e0   : > { %v1865_v38 = vpop.f32.mrf.mxu0  ;;  %3290 = vrcp.f32 %v2338_v3 }
 0x1e1   : > { %v1978_v30 = vpop.f32.mrf.mxu1  ;;  %v1866_v18 = vadd.f32 %v1865_v38, %v4022_v5  ;;  %v4044_v50 = vadd.f32 %v1976_v36, %v1864_v13  ;;  %v2924_v45 = vmul.f32 -1.442695, %v4040_v24  ;;  %v3275_v36 = vpop.eup %3274  ;;  %3292 = vpow2.f32 %v2923_v14 }
 0x1e2   : > { %v1867_v23 = vpop.f32.mrf.mxu0  ;;  %v3277_v13 = vpop.eup %3276  ;;  %3294 = vrcp.f32 %v2339_v42  ;;  %v2342_v38 = vadd.f32 1.0, %v3271_v54  ;;  %v2344_v24 = vadd.f32 1.0, %v3275_v36 }
 0x1e3   : > { %v1980_v47 = vpop.f32.mrf.mxu1  ;;  %v4046_v57 = vadd.f32 %v1978_v30, %v1866_v18  ;;  %v1868_v62 = vadd.f32 %v1867_v23, %v4017_v59  ;;  %3296 = vrcp.f32 %v2340_v31  ;;  %v2343_v18 = vadd.f32 1.0, %v3273_v15 }
 0x1e4   : > { %v1869_v51 = vpop.f32.mrf.mxu0  ;;  %3298 = vpow2.f32 %v2924_v45 }
 0x1e5   : > { %v1982_v44 = vpop.f32.mrf.mxu1  ;;  %v4049_v8 = vadd.f32 %v1980_v47, %v1868_v62  ;;  %v1870_v61 = vadd.f32 %v1869_v51, %v4022_v5  ;;  %v3279_v47 = vpop.eup %3278  ;;  %3300 = vrcp.f32 %v2341_v37  ;;  %v2345_v51 = vadd.f32 1.0, %v3277_v13 }
 0x1e6   : > { %v1873_v9 = vpop.f32.mrf.mxu0  ;;  %v3281_v60 = vpop.eup %3280  ;;  %3302 = vrcp.f32 %v2342_v38  ;;  %v2346_v35 = vadd.f32 1.0, %v3279_v47 }
 0x1e7   : > { %v1986_v19 = vpop.f32.mrf.mxu1  ;;  %v4052_v26 = vadd.f32 %v1982_v44, %v1870_v61  ;;  %v1874_v27 = vadd.f32 %v1873_v9, %v4017_v59  ;;  %v2925_v61 = vmul.f32 -1.442695, %v4044_v50  ;;  %3304 = vrcp.f32 %v2343_v18 }
 0x1e8   : > { %v1875_v40 = vpop.f32.mrf.mxu0  ;;  %v3283_v39 = vpop.eup %3282  ;;  %3306 = vrcp.f32 %v2344_v24  ;;  %v2347_v34 = vadd.f32 1.0, %v3281_v60  ;;  %v2927_v50 = vmul.f32 -1.442695, %v4049_v8 }
 0x1e9   : > { %v1988_v46 = vpop.f32.mrf.mxu1  ;;  %v4055_v48 = vadd.f32 %v1986_v19, %v1874_v27  ;;  %v1876_v49 = vadd.f32 %v1875_v40, %v4022_v5  ;;  %v2926_v27 = vmul.f32 -1.442695, %v4046_v57  ;;  %3308 = vrcp.f32 %v2345_v51 }
 0x1ea   : > { %v1877_v55 = vpop.f32.mrf.mxu0  ;;  %v3285_v56 = vpop.eup %3284  ;;  %3310 = vpow2.f32 %v2925_v61  ;;  %v4101_v57 = vrot.slane %v4012_v58, %v370_v22  ;;  %v2928_v29 = vmul.f32 -1.442695, %v4052_v26  ;;  %v4114_v22 = vrot.slane %v4012_v58, %v374_v25 }
 0x1eb   : > { %v1990_v28 = vpop.f32.mrf.mxu1  ;;  %v4058_v1 = vadd.f32 %v1988_v46, %v1876_v49  ;;  %v1878_v4 = vadd.f32 %v1877_v55, %v4017_v59  ;;  %v4096_v55 = vpop.eup %3286  ;;  %3312 = vrcp.f32 %v2346_v35  ;;  %v2349_v3 = vadd.f32 1.0, %v3285_v56 }
 0x1ec   : > { %v1879_v6 = vpop.f32.mrf.mxu0  ;;  %v3289_v33 = vpop.eup %3288  ;;  %3314 = vpow2.f32 %v2926_v27 }
 0x1ed   : > { %v1992_v11 = vpop.f32.mrf.mxu1  ;;  %v4061_v0 = vadd.f32 %v1990_v28, %v1878_v4  ;;  %v1880_v10 = vadd.f32 %v1879_v6, %v4022_v5  ;;  %v2348_v28 = vadd.f32 1.0, %v3283_v39  ;;  %v4108_v2 = vpop.eup %3290  ;;  %3316 = vrcp.f32 %v2347_v34 }
 0x1ee   : > { %v1883_v43 = vpop.f32.mrf.mxu0  ;;  %v3293_v6 = vpop.eup %3292  ;;  %3318 = vpow2.f32 %v2927_v50  ;;  %v2350_v26 = vadd.f32 1.0, %v3289_v33 }
 0x1ef   : > { %v1996_v52 = vpop.f32.mrf.mxu1  ;;  %v4064_v32 = vadd.f32 %v1992_v11, %v1880_v10  ;;  %v1884_v41 = vadd.f32 %v1883_v43, %v4017_v59  ;;  %v2929_v11 = vmul.f32 -1.442695, %v4055_v48  ;;  %v4116_v10 = vpop.eup %3294  ;;  %3320 = vrcp.f32 %v2348_v28 }
 0x1f0   : > { %v4068_v21 = vpop.f32.mrf.mxu0  ;;  %v4119_v43 = vpop.eup %3296  ;;  %3322 = vpow2.f32 %v2928_v29  ;;  %v2351_v31 = vadd.f32 1.0, %v3293_v6  ;;  %v2931_v58 = vmul.f32 -1.442695, %v4061_v0 }
 0x1f1   : > { %v4070_v16 = vpop.f32.mrf.mxu1  ;;  %v4072_v12 = vadd.f32 %v1996_v52, %v1884_v41  ;;  %v2930_v52 = vmul.f32 -1.442695, %v4058_v1  ;;  %v3299_v48 = vpop.eup %3298  ;;  %3324 = vrcp.f32 %v2349_v3  ;;  %v2932_v60 = vmul.f32 -1.442695, %v4064_v32 }
 0x1f2   : > { %v1887_v30 = vpop.f32.mrf.mxu0  ;;  %v4122_v25 = vpop.eup %3300  ;;  %3326 = vpow2.f32 %v2929_v11  ;;  %v2352_v38 = vadd.f32 1.0, %v3299_v48  ;;  %v4153_v48 = vld [vmem:[%s4440_s5] sm:$0xff] }
 0x1f3   : > { %v2000_v17 = vpop.f32.mrf.mxu1  ;;  %v1888_v23 = vadd.f32 %v1887_v30, %v4017_v59  ;;  %v4126_v36 = vpop.eup %3302  ;;  %3328 = vrcp.f32 %v2350_v26  ;;  %v1886_v30 = vadd.f32 %v4068_v21, %v4022_v5  ;;  %v2933_v56 = vmul.f32 -1.442695, %v4072_v12 }
 0x1f4   : > { %v4075_v53 = vpop.f32.mrf.mxu0  ;;  %v4129_v13 = vpop.eup %3304  ;;  %3330 = vpow2.f32 %v2930_v52 }
 0x1f5   : > { %v4077_v62 = vpop.f32.mrf.mxu1  ;;  %v4079_v44 = vadd.f32 %v2000_v17, %v1888_v23  ;;  %v4133_v23 = vpop.eup %3306  ;;  %3332 = vrcp.f32 %v2351_v31  ;;  %v1999_v50 = vadd.f32 %v4070_v16, %v1886_v30 }
 0x1f6   : > { %v4082_v9 = vpop.f32.mrf.mxu0  ;;  %v4136_v51 = vpop.eup %3308  ;;  %3334 = vpow2.f32 %v2931_v58 }
 0x1f7   : > { %v4084_v19 = vpop.f32.mrf.mxu1  ;;  %v3311_v35 = vpop.eup %3310  ;;  %v2934_v16 = vmul.f32 -1.442695, %v1999_v50 }
 0x1f8   : > { %v4087_v40 = vpop.f32.mrf.mxu0  ;;  %v4140_v34 = vpop.eup %3312  ;;  %v2353_v11 = vadd.f32 1.0, %v3311_v35 }
 0x1f9   : > { %v4089_v46 = vpop.f32.mrf.mxu1  ;;  %v3315_v33 = vpop.eup %3314 }
 0x1fa   : > { %v4092_v49 = vpop.f32.mrf.mxu0  ;;  %v4145_v6 = vpop.eup %3316 }
 0x1fb   : > { %v4094_v63 = vpop.f32.mrf.mxu1  ;;  %v3319_v26 = vpop.eup %3318 }
 0x1fc   : > { %v4104_v4 = vpop.f32.mrf.mxu0  ;;  %v4148_v52 = vpop.eup %3320 }
 0x1fd   : > { %v4106_v8 = vpop.f32.mrf.mxu1  ;;  %v4155_v31 = vpop.eup %3322 }
 0x1fe   : > { %v2049_v14 = vpop.f32.mrf.mxu0 }
 0x1ff   : > { %v2050_v7 = vadd.f32 %v2049_v14, %v4101_v57  ;;  %v2162_v42 = vpop.f32.mrf.mxu1 }
 0x200   : > { %v2051_v54 = vpop.f32.mrf.mxu0 }
 0x201   : > { %v2163_v20 = vadd.f32 %v2162_v42, %v2050_v7  ;;  %v2164_v41 = vpop.f32.mrf.mxu1  ;;  %v2052_v15 = vadd.f32 %v2051_v54, %v4114_v22 }
 0x202   : > { %v2053_v45 = vpop.f32.mrf.mxu0 }
 0x203   : > { %v2054_v37 = vadd.f32 %v2053_v45, %v4101_v57  ;;  %v2166_v1 = vpop.f32.mrf.mxu1  ;;  %v2165_v17 = vadd.f32 %v2164_v41, %v2052_v15  ;;  %3336 = vtanh.f32 %v2163_v20  ;;  %v4158_v15 = vpop.eup %3324  ;;  %v2354_v45 = vadd.f32 1.0, %v3315_v33  ;;  %v2514_v33 = vld [vmem:[%s4441_s6] sm:$0xff] }
 0x204   : > { %v2055_v18 = vpop.f32.mrf.mxu0  ;;  %3338 = vrcp.f32 %v2352_v38  ;;  %v4162_v38 = vpop.eup %3326  ;;  %2517 = vperm.xlu0 %3045, %v2514_v33  }
 0x205   : > { %v2167_v0 = vadd.f32 %v2166_v1, %v2054_v37  ;;  %v2056_v47 = vadd.f32 %v2055_v18, %v4114_v22  ;;  %v2168_v24 = vpop.f32.mrf.mxu1  ;;  %3340 = vtanh.f32 %v2165_v17  ;;  %v2942_v1 = vcombine.high %v4153_v48, %v4153_v48 }
 0x206   : > { %v2059_v61 = vpop.f32.mrf.mxu0  ;;  %3342 = vpow2.f32 %v2932_v60 }
 0x207   : > { %v2169_v39 = vadd.f32 %v2168_v24, %v2056_v47  ;;  %v2060_v21 = vadd.f32 %v2059_v61, %v4101_v57  ;;  %v2172_v27 = vpop.f32.mrf.mxu1  ;;  %3344 = vtanh.f32 %v2167_v0  ;;  %v4165_v0 = vpop.eup %3328  ;;  %v2935_v47 = vmul.f32 -1.442695, %v4079_v44  ;;  %2559 = vmatprep.mubr.bf16.mxu0 %v2942_v1 }
 0x208   : > { %v2061_v28 = vpop.f32.mrf.mxu0  ;;  %3346 = vpow2.f32 %v2933_v56  ;;  %v1890_v24 = vadd.f32 %v4075_v53, %v4022_v5  ;;  %v4170_v61 = vpop.eup %3330 }
 0x209   : > { %v2173_v29 = vadd.f32 %v2172_v27, %v2060_v21  ;;  %v2062_v32 = vadd.f32 %v2061_v28, %v4114_v22  ;;  %v2174_v3 = vpop.f32.mrf.mxu1  ;;  %3348 = vtanh.f32 %v2169_v39  ;;  %v4173_v27 = vpop.eup %3332 }
 0x20a   : > { %v2063_v14 = vpop.f32.mrf.mxu0  ;;  %3350 = vrcp.f32 %v2353_v11  ;;  %v4175_v50 = vpop.eup %3334 }
 0x20b   : > { %v2175_v7 = vadd.f32 %v2174_v3, %v2062_v32  ;;  %v2064_v42 = vadd.f32 %v2063_v14, %v4101_v57  ;;  %v2176_v12 = vpop.f32.mrf.mxu1  ;;  %3352 = vtanh.f32 %v2173_v29  ;;  %v2003_v32 = vadd.f32 %v4077_v62, %v1890_v24 }
 0x20c   : > { %v2065_v54 = vpop.f32.mrf.mxu0  ;;  %3354 = vpow2.f32 %v2934_v16  ;;  %v1896_v62 = vadd.f32 %v4087_v40, %v4022_v5  ;;  %v1900_v40 = vadd.f32 %v4104_v4, %v4022_v5 }
 0x20d   : > { %v2177_v20 = vadd.f32 %v2176_v12, %v2064_v42  ;;  %v2066_v41 = vadd.f32 %v2065_v54, %v4114_v22  ;;  %v2178_v58 = vpop.f32.mrf.mxu1  ;;  %3356 = vtanh.f32 %v2175_v7  ;;  %v2355_v54 = vadd.f32 1.0, %v3319_v26 }
 0x20e   : > { %v2069_v37 = vpop.f32.mrf.mxu0  ;;  %3358 = vrcp.f32 %v2354_v45  ;;  %v2936_v26 = vmul.f32 -1.442695, %v2003_v32  ;;  %v2009_v5 = vadd.f32 %v4089_v46, %v1896_v62  ;;  %v2013_v33 = vadd.f32 %v4106_v8, %v1900_v40 }
 0x20f   : > { %v2179_v30 = vadd.f32 %v2178_v58, %v2066_v41  ;;  %v2070_v17 = vadd.f32 %v2069_v37, %v4101_v57  ;;  %v2182_v18 = vpop.f32.mrf.mxu1  ;;  %3360 = vtanh.f32 %v2177_v20  ;;  %v1894_v20 = vadd.f32 %v4082_v9, %v4017_v59 }
 0x210   : > { %v2071_v60 = vpop.f32.mrf.mxu0  ;;  %v3337_v29 = vpop.eup %3336  ;;  %3362 = vpow2.f32 %v2935_v47  ;;  %v1898_v9 = vadd.f32 %v4092_v49, %v4017_v59 }
 0x211   : > { %v2183_v35 = vadd.f32 %v2182_v18, %v2070_v17  ;;  %v2072_v39 = vadd.f32 %v2071_v60, %v4114_v22  ;;  %v2184_v21 = vpop.f32.mrf.mxu1  ;;  %v4182_v11 = vpop.eup %3338  ;;  %3364 = vtanh.f32 %v2179_v30  ;;  %v4186_v12 = vmul.f32 %v3337_v29, %v4096_v55 }
 0x212   : > { %v2073_v56 = vpop.f32.mrf.mxu0  ;;  %v3341_v16 = vpop.eup %3340  ;;  %v2007_v59 = vadd.f32 %v4084_v19, %v1894_v20 }
 0x213   : > { %v2185_v44 = vadd.f32 %v2184_v21, %v2072_v39  ;;  %v2074_v28 = vadd.f32 %v2073_v56, %v4101_v57  ;;  %v2186_v53 = vpop.f32.mrf.mxu1  ;;  %3366 = vtanh.f32 %v2183_v35  ;;  %v4192_v58 = vpop.eup %3342  ;;  %v4196_v55 = vmul.f32 %v3341_v16, %v4108_v2 }
 0x214   : > { %v2075_v3 = vpop.f32.mrf.mxu0  ;;  %v3345_v30 = vpop.eup %3344  ;;  %v2356_v39 = vadd.f32 1.0, %v4155_v31 }
 0x215   : > { %v2187_v14 = vadd.f32 %v2186_v53, %v2074_v28  ;;  %v2076_v7 = vadd.f32 %v2075_v3, %v4114_v22  ;;  %v2188_v42 = vpop.f32.mrf.mxu1  ;;  %3368 = vtanh.f32 %v2185_v44  ;;  %v4202_v18 = vpop.eup %3346  ;;  %v4206_v2 = vmul.f32 %v3345_v30, %v4116_v10 }
 0x216   : > { %v2079_v41 = vpop.f32.mrf.mxu0  ;;  %v3349_v35 = vpop.eup %3348  ;;  %v2011_v28 = vadd.f32 %v4094_v63, %v1898_v9  ;;  %v2938_v63 = vmul.f32 -1.442695, %v2009_v5  ;;  %v2940_v30 = vmul.f32 -1.442695, %v2013_v33  ;;  %v2358_v33 = vadd.f32 1.0, %v4170_v61 }
 0x217   : > { %v2189_v45 = vadd.f32 %v2188_v42, %v2076_v7  ;;  %v2080_v37 = vadd.f32 %v2079_v41, %v4101_v57  ;;  %v2192_v1 = vpop.f32.mrf.mxu1  ;;  %3370 = vtanh.f32 %v2187_v14  ;;  %v4211_v4 = vpop.eup %3350  ;;  %v4215_v44 = vmul.f32 %v3349_v35, %v4119_v43 }
 0x218   : > { %v2081_v17 = vpop.f32.mrf.mxu0  ;;  %v3353_v10 = vpop.eup %3352  ;;  %v2497_v19 = vpack.c.bf16 %v4206_v2, %v4186_v12  ;;  %v2937_v7 = vmul.f32 -1.442695, %v2007_v59  ;;  %v2359_v61 = vadd.f32 1.0, %v4175_v50 }
 0x219   : > { %3372 = vtanh.f32 %v2189_v45  ;;  %v2193_v47 = vadd.f32 %v2192_v1, %v2080_v37  ;;  %v2082_v24 = vadd.f32 %v2081_v17, %v4114_v22  ;;  %v2194_v60 = vpop.f32.mrf.mxu1  ;;  %v4220_v46 = vpop.eup %3354  ;;  %v4225_v43 = vmul.f32 %v3353_v10, %v4122_v25 }
 0x21a   : > { %3374 = vrcp.f32 %v2355_v54  ;;  %v2083_v49 = vpop.f32.mrf.mxu0  ;;  %v3357_v14 = vpop.eup %3356  ;;  %v2498_v16 = vpack.c.bf16 %v4215_v44, %v4196_v55  ;;  %v2939_v45 = vmul.f32 -1.442695, %v2011_v28 }
 0x21b   : > { %3376 = vtanh.f32 %v2193_v47  ;;  %v2084_v21 = vadd.f32 %v2083_v49, %v4101_v57  ;;  %v2196_v56 = vpop.f32.mrf.mxu1  ;;  %v2195_v53 = vadd.f32 %v2194_v60, %v2082_v24  ;;  %v4229_v54 = vpop.eup %3358  ;;  %v4233_v41 = vmul.f32 %v3357_v14, %v4126_v36 }
 0x21c   : > { %3378 = vpow2.f32 %v2936_v26  ;;  %v2085_v31 = vpop.f32.mrf.mxu0  ;;  %v3361_v25 = vpop.eup %3360  ;;  %v2357_v60 = vadd.f32 1.0, %v4162_v38 }
 0x21d   : > { %v2197_v29 = vadd.f32 %v2196_v56, %v2084_v21  ;;  %v2086_v32 = vadd.f32 %v2085_v31, %v4114_v22  ;;  %v2198_v3 = vpop.f32.mrf.mxu1  ;;  %3380 = vrcp.f32 %v2356_v39  ;;  %v4235_v1 = vpop.eup %3362  ;;  %v4239_v40 = vmul.f32 %v3361_v25, %v4129_v13 }
 0x21e   : > { %v2089_v42 = vpop.f32.mrf.mxu0  ;;  %v3365_v17 = vpop.eup %3364 }
 0x21f   : > { %3382 = vtanh.f32 %v2197_v29  ;;  %v2199_v20 = vadd.f32 %v2198_v3, %v2086_v32  ;;  %v2090_v8 = vadd.f32 %v2089_v42, %v4101_v57  ;;  %v2202_v62 = vpop.f32.mrf.mxu1  ;;  %v4244_v59 = vmul.f32 %v3365_v17, %v4133_v23 }
 0x220   : > { %3384 = vtanh.f32 %v2195_v53  ;;  %v2091_v37 = vpop.f32.mrf.mxu0  ;;  %v3367_v36 = vpop.eup %3366  ;;  %v2499_v56 = vpack.c.bf16 %v4239_v40, %v4225_v43 }
 0x221   : > { %3386 = vtanh.f32 %v2199_v20  ;;  %v2092_v26 = vadd.f32 %v2091_v37, %v4114_v22  ;;  %v2204_v9 = vpop.f32.mrf.mxu1  ;;  %v2203_v47 = vadd.f32 %v2202_v62, %v2090_v8  ;;  %v4247_v13 = vmul.f32 %v3367_v36, %v4136_v51 }
 0x222   : > { %3388 = vpow2.f32 %v2938_v63  ;;  %v2093_v24 = vpop.f32.mrf.mxu0  ;;  %v3369_v5 = vpop.eup %3368  ;;  %v2500_v32 = vpack.c.bf16 %v4244_v59, %v4233_v41 }
 0x223   : > { %3390 = vpow2.f32 %v2937_v7  ;;  %v2094_v35 = vadd.f32 %v2093_v24, %v4101_v57  ;;  %v2206_v39 = vpop.f32.mrf.mxu1  ;;  %v2205_v49 = vadd.f32 %v2204_v9, %v2092_v26  ;;  %v4253_v31 = vmul.f32 %v3369_v5, %v4140_v34 }
 0x224   : > { %3392 = vpow2.f32 %v2939_v45  ;;  %v2095_v21 = vpop.f32.mrf.mxu0  ;;  %v3371_v10 = vpop.eup %3370  ;;  %v2360_v24 = vadd.f32 1.0, %v4192_v58 }
 0x225   : > { %3394 = vpow2.f32 %v2940_v30  ;;  %v2207_v38 = vadd.f32 %v2206_v39, %v2094_v35  ;;  %v2096_v28 = vadd.f32 %v2095_v21, %v4114_v22  ;;  %v2208_v53 = vpop.f32.mrf.mxu1  ;;  %v4257_v51 = vmul.f32 %v3371_v10, %v4145_v6 }
 0x226   : > { %v3373_v23 = vpop.eup %3372  ;;  %3396 = vtanh.f32 %v2203_v47  ;;  %v2099_v29 = vpop.f32.mrf.mxu0  ;;  %v2361_v21 = vadd.f32 1.0, %v4202_v18  ;;  %v2363_v10 = vadd.f32 1.0, %v4235_v1 }
 0x227   : > { %v4261_v3 = vpop.eup %3374  ;;  %3398 = vtanh.f32 %v2207_v38  ;;  %v2209_v14 = vadd.f32 %v2208_v53, %v2096_v28  ;;  %v2100_v7 = vadd.f32 %v2099_v29, %v4101_v57  ;;  %v2212_v63 = vpop.f32.mrf.mxu1  ;;  %v4265_v34 = vmul.f32 %v3373_v23, %v4148_v52 }
 0x228   : > { %v3377_v42 = vpop.eup %3376  ;;  %3400 = vtanh.f32 %v2205_v49  ;;  %v2101_v20 = vpop.f32.mrf.mxu0  ;;  %v2501_v6 = vpack.c.bf16 %v4257_v51, %v4247_v13  ;;  %v2941_v13 = vcombine.low %v4153_v48, %v4153_v48 }
 0x229   : > { %v3379_v8 = vpop.eup %3378  ;;  %3402 = vtanh.f32 %v2209_v14  ;;  %v2213_v62 = vadd.f32 %v2212_v63, %v2100_v7  ;;  %v2102_v25 = vadd.f32 %v2101_v20, %v4114_v22  ;;  %v2214_v45 = vpop.f32.mrf.mxu1  ;;  %v4272_v37 = vmul.f32 %v3377_v42, %v4158_v15 }
 0x22a   : > { %3404 = vrcp.f32 %v2357_v60  ;;  %v2103_v52 = vpop.f32.mrf.mxu0  ;;  %v2502_v30 = vpack.c.bf16 %v4265_v34, %v4253_v31  ;;  %v4276_v50 = vpop.eup %3380 }
 0x22b   : > { %3406 = vrcp.f32 %v2358_v33  ;;  %v2215_v26 = vadd.f32 %v2214_v45, %v2102_v25  ;;  %v2104_v9 = vadd.f32 %v2103_v52, %v4101_v57  ;;  %v2216_v17 = vpop.f32.mrf.mxu1 }
 0x22c   : > { %v3383_v47 = vpop.eup %3382  ;;  %3408 = vrcp.f32 %v2359_v61  ;;  %v2105_v36 = vpop.f32.mrf.mxu0 }
 0x22d   : > { %v3385_v35 = vpop.eup %3384  ;;  %3410 = vtanh.f32 %v2213_v62  ;;  %v2217_v15 = vadd.f32 %v2216_v17, %v2104_v9  ;;  %v2106_v60 = vadd.f32 %v2105_v36, %v4114_v22  ;;  %v2218_v39 = vpop.f32.mrf.mxu1  ;;  %v4282_v5 = vmul.f32 %v3383_v47, %v4173_v27 }
 0x22e   : > { %v3387_v49 = vpop.eup %3386  ;;  %3412 = vtanh.f32 %v2215_v26  ;;  %v2109_v38 = vpop.f32.mrf.mxu0  ;;  %v2364_v27 = vadd.f32 1.0, %v3379_v8  ;;  %v4293_v18 = vmul.f32 %v3385_v35, %v4165_v0 }
 0x22f   : > { %v3389_v28 = vpop.eup %3388  ;;  %3414 = vtanh.f32 %v2217_v15  ;;  %v2219_v58 = vadd.f32 %v2218_v39, %v2106_v60  ;;  %v2110_v53 = vadd.f32 %v2109_v38, %v4101_v57  ;;  %v2222_v23 = vpop.f32.mrf.mxu1  ;;  %v4288_v33 = vmul.f32 %v3387_v49, %v4182_v11 }
 0x230   : > { %v4290_v29 = vpop.eup %3390  ;;  %3416 = vrcp.f32 %v2360_v24  ;;  %v2111_v14 = vpop.f32.mrf.mxu0  ;;  %v2503_v1 = vpack.c.bf16 %v4282_v5, %v4272_v37  ;;  %v2366_v20 = vadd.f32 1.0, %v3389_v28 }
 0x231   : > { %v3393_v7 = vpop.eup %3392  ;;  %3418 = vtanh.f32 %v2219_v58  ;;  %v2223_v63 = vadd.f32 %v2222_v23, %v2110_v53  ;;  %v2224_v42 = vpop.f32.mrf.mxu1  ;;  %v2504_v62 = vpack.c.bf16 %v4288_v33, %v4293_v18  ;;  %v2112_v8 = vadd.f32 %v2111_v14, %v4114_v22 }
 0x232   : > { %v3395_v61 = vpop.eup %3394  ;;  %3420 = vrcp.f32 %v2361_v21  ;;  %v2113_v11 = vpop.f32.mrf.mxu0  ;;  %v2367_v26 = vadd.f32 1.0, %v3393_v7 }
 0x233   : > { %v3397_v25 = vpop.eup %3396  ;;  %3422 = vrcp.f32 %v2363_v10  ;;  %v2114_v0 = vadd.f32 %v2113_v11, %v4101_v57  ;;  %v2226_v45 = vpop.f32.mrf.mxu1  ;;  %v2368_v60 = vadd.f32 1.0, %v3395_v61  ;;  %v2225_v10 = vadd.f32 %v2224_v42, %v2112_v8 }
 0x234   : > { %v3399_v52 = vpop.eup %3398  ;;  %3424 = vrcp.f32 %v2364_v27  ;;  %v2115_v9 = vpop.f32.mrf.mxu0  ;;  %v4306_v49 = vmul.f32 %v3397_v25, %v4211_v4 }
 0x235   : > { %v3401_v17 = vpop.eup %3400  ;;  %3426 = vtanh.f32 %v2223_v63  ;;  %v2227_v47 = vadd.f32 %v2226_v45, %v2114_v0  ;;  %v2116_v24 = vadd.f32 %v2115_v9, %v4114_v22  ;;  %v2228_v36 = vpop.f32.mrf.mxu1  ;;  %v4303_v35 = vmul.f32 %v3399_v52, %v4261_v3 }
 0x236   : > { %v3403_v15 = vpop.eup %3402  ;;  %3428 = vrcp.f32 %v2366_v20  ;;  %v2119_v39 = vpop.f32.mrf.mxu0  ;;  %v4313_v27 = vmul.f32 %v3401_v17, %v4229_v54 }
 0x237   : > { %v3405_v21 = vpop.eup %3404  ;;  %3430 = vtanh.f32 %v2227_v47  ;;  %v2232_v38 = vpop.f32.mrf.mxu1  ;;  %v4309_v28 = vmul.f32 %v3403_v15, %v4276_v50  ;;  %v2229_v53 = vadd.f32 %v2228_v36, %v2116_v24  ;;  %v2120_v23 = vadd.f32 %v2119_v39, %v4101_v57 }
 0x238   : > { %v3407_v58 = vpop.eup %3406  ;;  %v2121_v3 = vpop.f32.mrf.mxu0  ;;  %v2505_v14 = vpack.c.bf16 %v4303_v35, %v4306_v49  ;;  %3432 = vrcp.f32 %v2367_v26  ;;  %v2362_v36 = vadd.f32 1.0, %v4220_v46  ;;  %v2365_v15 = vadd.f32 1.0, %v4290_v29 }
 0x239   : > { %v3409_v4 = vpop.eup %3408  ;;  %v2122_v7 = vadd.f32 %v2121_v3, %v4114_v22  ;;  %v2234_v63 = vpop.f32.mrf.mxu1  ;;  %3434 = vrcp.f32 %v2368_v60  ;;  %v2506_v61 = vpack.c.bf16 %v4309_v28, %v4313_v27  ;;  %v2233_v0 = vadd.f32 %v2232_v38, %v2120_v23 }
 0x23a   : > { %v3411_v42 = vpop.eup %3410  ;;  %v2123_v50 = vpop.f32.mrf.mxu0  ;;  %3436 = vtanh.f32 %v2225_v10 }
 0x23b   : > { %v3413_v20 = vpop.eup %3412  ;;  %v2235_v11 = vadd.f32 %v2234_v63, %v2122_v7  ;;  %v2124_v54 = vadd.f32 %v2123_v50, %v4101_v57  ;;  %v2236_v25 = vpop.f32.mrf.mxu1  ;;  %3438 = vtanh.f32 %v2229_v53  ;;  %v2485_v17 = vmul.f32 %v3411_v42, %v3405_v21 }
 0x23c   : > { %v3415_v8 = vpop.eup %3414  ;;  %v2125_v45 = vpop.f32.mrf.mxu0  ;;  %v2486_v39 = vmul.f32 %v3413_v20, %v3407_v58 }
 0x23d   : > { %v3417_v52 = vpop.eup %3416  ;;  %v2237_v26 = vadd.f32 %v2236_v25, %v2124_v54  ;;  %v2126_v9 = vadd.f32 %v2125_v45, %v4114_v22  ;;  %v2487_v47 = vmul.f32 %v3415_v8, %v3409_v4  ;;  %3440 = vtanh.f32 %v2235_v11  ;;  %v2238_v60 = vpop.f32.mrf.mxu1 }
 0x23e   : > { %v3419_v24 = vpop.eup %3418 }
 0x23f   : > { %v3421_v57 = vpop.eup %3420  ;;  %3442 = vtanh.f32 %v2237_v26  ;;  %v2239_v10 = vadd.f32 %v2238_v60, %v2126_v9  ;;  %v2488_v53 = vmul.f32 %v3419_v24, %v3417_v52  ;;  %v2507_v38 = vpack.c.bf16 %v2487_v47, %v2485_v17 }
 0x240   : > { %v3423_v23 = vpop.eup %3422  ;;  %3444 = vtanh.f32 %v2233_v0 }
 0x241   : > { %v3425_v3 = vpop.eup %3424  ;;  %3446 = vtanh.f32 %v2239_v10  ;;  %v2508_v22 = vpack.c.bf16 %v2488_v53, %v2486_v39 }
 0x242   : > { %v3427_v21 = vpop.eup %3426  ;;  %3448 = vrcp.f32 %v2365_v15 }
 0x243   : > { %v3429_v4 = vpop.eup %3428  ;;  %3450 = vrcp.f32 %v2362_v36  ;;  %v2489_v7 = vmul.f32 %v3427_v21, %v3421_v57 }
 0x244   : > { %v3431_v46 = vpop.eup %3430 }
 0x245   : > { %v2491_v29 = vmul.f32 %v3431_v46, %v3423_v23  ;;  %v3433_v63 = vpop.eup %3432 }
 0x246   : > { %v3435_v42 = vpop.eup %3434 }
 0x247   : > { %v2509_v58 = vpack.c.bf16 %v2491_v29, %v2489_v7  ;;  %v3437_v50 = vpop.eup %3436 }
 0x248   : > { %v3439_v20 = vpop.eup %3438 }
 0x249   : > { %v2492_v9 = vmul.f32 %v3439_v20, %v3425_v3 }
 0x24a   : > { %v3441_v11 = vpop.eup %3440 }
 0x24b   : > { %v2494_v52 = vmul.f32 %v3441_v11, %v3429_v4 }
 0x24c   : > { %v3443_v54 = vpop.eup %3442 }
 0x24d   : > { %v3445_v25 = vpop.eup %3444  ;;  %v2495_v0 = vmul.f32 %v3443_v54, %v3433_v63 }
 0x24e   : > { %v3447_v8 = vpop.eup %3446 }
 0x24f   : > { %v3449_v45 = vpop.eup %3448  ;;  %v2496_v26 = vmul.f32 %v3447_v8, %v3435_v42 }
 0x250   : > { %v3451_v17 = vpop.eup %3450  ;;  %v2493_v47 = vmul.f32 %v3449_v45, %v3445_v25 }
 0x251   : > { %v2512_v24 = vpack.c.bf16 %v2496_v26, %v2494_v52  ;;  %v2490_v36 = vmul.f32 %v3451_v17, %v3437_v50 }
 0x252   : > { %v2511_v15 = vpack.c.bf16 %v2495_v0, %v2493_v47 }
 0x253   : > { %2527 = vmatprep.subr.bf16.mxu0 %v2512_v24  ;;  %v2510_v60 = vpack.c.bf16 %v2492_v9, %v2490_v36 }
 0x254   : > { %2528 = vmatpush1.bf16.xpose.msra.mxu0 %v2511_v15 }
 0x255   : > { %2529 = vmatprep.subr.bf16.mxu0 %v2510_v60 }
 0x25c   : > { %2530 = vmatpush1.bf16.xpose.msra.mxu0 %v2509_v58 }
 0x25d   : > { %2531 = vmatprep.subr.bf16.mxu0 %v2508_v22 }
 0x264   : > { %2532 = vmatpush1.bf16.xpose.msra.mxu0 %v2507_v38 }
 0x265   : > { %2533 = vmatprep.subr.bf16.mxu0 %v2506_v61 }
 0x26c   : > { %2534 = vmatpush1.bf16.xpose.msra.mxu0 %v2505_v14 }
 0x26d   : > { %2535 = vmatprep.subr.bf16.mxu0 %v2504_v62 }
 0x274   : > { %2536 = vmatpush1.bf16.xpose.msra.mxu0 %v2503_v1 }
 0x275   : > { %2537 = vmatprep.subr.bf16.mxu0 %v2502_v30 }
 0x27c   : > { %2538 = vmatpush1.bf16.xpose.msra.mxu0 %v2501_v6 }
 0x27d   : > { %2539 = vmatprep.subr.bf16.mxu0 %v2500_v32 }
 0x284   : > { %2540 = vmatpush1.bf16.xpose.msra.mxu0 %v2499_v56 }
 0x285   : > { %2541 = vmatprep.subr.bf16.mxu0 %v2498_v16 }
 0x28c   : > { %2542 = vmatpush1.bf16.xpose.msra.mxu0 %v2497_v19 }
 0x293   : > { %2560 = vmatmul.mubr.bf16.vlgmr.msra.gmra.mxu0 %v2941_v13 }
 0x294   : > { %3491 = shalt.err (!%p3488_p0)
}
 0x295   : > { %s3492_s13 = scalar_lea.hbm %s4361_s23, 4096  ;;  %s3496_s17 = scalar_lea.hbm %s4442_s7, 8192 }
 0x296   : > { %p3493_p1 = scmp.ne.s32.totalorder %s4361_s23, %s3492_s13  ;;  %p3497_p4 = scmp.lt.s32.totalorder %s4361_s23, %s4442_s7 }
 0x297   : > { %p3498_p7 = scmp.lt.s32.totalorder %s3496_s17, %s3492_s13 }
 0x298   : > { %p3494_p2 = pnand %p3493_p1, %p3665_p5 }
 0x299   : > { %p3499_p6 = por %p3498_p7, %p3497_p4 }
 0x29a   : > { %p3495_p3 = pneg %p3494_p2 }
 0x29c   : > { %p3500_p8 = pnand %p3499_p6, %p3495_p3 }
 0x29e   : > { %3503 = shalt.err (!%p3500_p8)
}
 0x29f   : > { %s3579_s25 = smov 256   ;;  %s3580_s12 = smov 16   ;;  %v2518_v48 = vpop.permute.xlu0 %2517 }
 0x2a0   : > { %2989 = dma.vmem_to_hbm [thread:$0]  (%p3665_p5), %s4363_s20, 4096, %s4361_s23, %s2569_s26, %s3579_s25, %s3579_s25, %s3580_s12  }
 0x2a1   : > { %s2714_s24 = sshll.u32 %s3790_s22, 3  ;;  %s2948_s18 = sshll.u32 %s3648_s9, 7 }
 0x2a2   : > { %s325_s13 = scalar_lea.vmem [#allocation6], %s2714_s24  ;;  %s4393_s10 = scalar_lea.hbm %s4443_s8, %s2948_s18 }
 0x2a3   : > { %s2604_s19 = sshll.u32 %s325_s13, 4  ;;  %s2574_s20 = scalar_lea.sflag [#allocation7], %s3790_s22  ;;  %s4395_s19 = int_to_ptr.vmem [resolvable:$true] %s2604_s19 }
 0x2a4   : > { %s3504_s23 = scalar_lea.vmem %s4395_s19, 128  ;;  %s3581_s9 = smov [#allocation6]  }
 0x2a5   : > { %p3505_p9 = scmp.ne.s32.totalorder %s4395_s19, %s3504_s23  ;;  %s3508_s26 = sshll.u32 %s3581_s9, 4  ;;  %s3509_s26 = int_to_ptr.vmem [resolvable:$false] %s3508_s26 }
 0x2a6   : > { %s3510_s25 = scalar_lea.vmem %s3509_s26, 256  ;;  %p3511_p12 = scmp.lt.s32.totalorder %s4395_s19, %s3509_s26 }
 0x2a7   : > { %p3506_p10 = pnand %p3505_p9, %p3665_p5  ;;  %p3512_p13 = scmp.lt.s32.totalorder %s3510_s25, %s3504_s23 }
 0x2a9   : > { %p3507_p11 = pneg %p3506_p10  ;;  %p3513_p0 = por %p3512_p13, %p3511_p12 }
 0x2ab   : > { %p3514_p1 = pnand %p3513_p0, %p3507_p11 }
 0x353   : > { %v2561_v12 = vpop.f32.mrf.mxu0 }
 0x354   : > { %v2562_v55 = vadd.f32 %v2561_v12, %v2518_v48 }
 0x355   : > { %v2563_v2 = vpop.f32.mrf.mxu0 }
 0x356   : > { %2567 = vst [vmem:[%s325_s13] sm:$0xff] %v2562_v55 }
 0x357   : > { %v2564_v44 = vpop.f32.mrf.mxu0 }
 0x358   : > { %3517 = shalt.err (!%p3514_p1)
}
 0x359   : > { %s3518_s12 = scalar_lea.hbm %s4393_s10, 128  ;;  %s3522_s18 = scalar_lea.hbm %s4443_s8, 256 }
 0x35a   : > { %p3519_p2 = scmp.ne.s32.totalorder %s4393_s10, %s3518_s12  ;;  %p3523_p7 = scmp.lt.s32.totalorder %s4393_s10, %s4443_s8 }
 0x35b   : > { %p3524_p6 = scmp.lt.s32.totalorder %s3522_s18, %s3518_s12 }
 0x35c   : > { %p3520_p3 = pnand %p3519_p2, %p3665_p5 }
 0x35d   : > { %p3525_p8 = por %p3524_p6, %p3523_p7 }
 0x35e   : > { %p3521_p4 = pneg %p3520_p3 }
 0x360   : > { %p3526_p9 = pnand %p3525_p8, %p3521_p4 }
 0x362   : > { %3529 = shalt.err (!%p3526_p9)
}
 0x363   : > { %2990 = dma.vmem_to_hbm [thread:$0]  (%p3665_p5), %s4395_s19, 128, %s4393_s10, %s2574_s20   ;;  %v2565_v19 = vpop.f32.mrf.mxu0 }
 0x364 PF: > { %p3006_p10 = scmp.ge.s32.totalorder %s3572_s30, 2  ;;  %s2616_s21 = sand.u32 1, %s3560_s27  }
 0x365   : > { %p4447_p11 = scmp.ne.s32.totalorder %s4445_s16, 0  ;;  %s2617_s23 = scalar_lea.sflag [#allocation4], %s2616_s21 }
 0x367   : > { %p2998_p12 = pnand %p3006_p10, %p4447_p11 }
 0x369   : > { %p2999_p13 = pneg %p2998_p12 }
 0x36b   : > { %3551 = dma.done.wait (%p2999_p13), %s2617_s23, 4096  }
 0x36c   : > { %3553 = vsyncadd (%p2999_p13), %s2617_s23, 4294963200  ;;  %s2626_s9 = scalar_lea.sflag [#allocation7], %s2616_s21 }
 0x36d   : > { %3555 = dma.done.wait (%p2999_p13), %s2626_s9, 128  }
 0x36e   : > { %3557 = vsyncadd (%p2999_p13), %s2626_s9, 4294967168  ;;  %p23_p5 = scmp.ge.s32.totalorder %s3652_s11, 4   ;;  %s4448_s27 = smov %s3564_s28 }
 0x36f   : > { %s4449_s28 = smov %s3568_s29  ;;  %s4450_s29 = smov %s3663_s14 }
 0x370   : > { %s4451_s30 = smov %s3652_s11  ;;  %25 = sbr.rel (!%p23_p5) target bundleno = 6 (0x6), region = 105 }
 0x375   :  { %2631 = vsyncpa [#allocation3], 1 }
 0x376   :  { %2633 = vsyncpa [#allocation3 + $0x1], 1 }
 0x377   :  { %2634 = vsyncpa [#allocation4], 1 }
 0x378   :  { %2636 = vsyncpa [#allocation4 + $0x1], 1 }
 0x379   :  { %2637 = vsyncpa [#allocation7], 1 }
 0x37a   :  { %2639 = vsyncpa [#allocation7 + $0x1], 1 }

</bundles_post_ra>
